<compile_context>
chip_gen: v7x
topology: tpu7x:2x2x1
jax: 0.10.0
libtpu: 0.0.40
codegen_flags: <defaults>
</compile_context>

<pallas_src>
import jax
import jax.numpy as jnp
from jax.experimental import pallas as pl
from jax.experimental.pallas import tpu as pltpu


# All refs together carry 16 f32 values per pixel:
#   msk(1) + pos(2) + img(3) + gt(3) + mesh(2) + match(5) = 16  ->  64 B/pixel.
_BYTES_PER_PIXEL = 16 * 4
# Conservative live-VMEM budget valid on every generation (v7x: 64 MiB per TC).
_VMEM_BUDGET_BYTES = 40 << 20
_VMEM_LIMIT_BYTES = 48 << 20


def _pick_tile_h(H, W):
    """Largest row tile (multiple of 8, dividing H) whose double-buffered
    working set fits in the VMEM budget."""
    bytes_per_row = W * _BYTES_PER_PIXEL
    max_rows = _VMEM_BUDGET_BYTES // (2 * bytes_per_row)   # x2: double buffering
    if H % 8 != 0 or max_rows >= H:
        return H
    tile = max(8, (min(int(max_rows), H) // 8) * 8)
    while H % tile != 0:
        tile -= 8
    return max(tile, 8)


def point_loss_kernel(msk_ref, pos_ref, img_ref, gt_ref, mesh_ref,
                      match_ref, loss_ref):
    """One row-band of the image.

    msk_ref  : (TH, W)     f32, 1.0 where the rendered pixel has a position
    pos_ref  : (2, TH, W)  f32 in [-1, 1]
    img_ref  : (3, TH, W)  f32 rendered rgb
    gt_ref   : (3, TH, W)  f32 ground-truth rgb
    mesh_ref : (2, TH, W)  f32 canonical meshgrid positions in [0, 1]
    match_ref: (5, TH, W)  f32 out, match_point_5d (rgb, xy), channel-first
    loss_ref : (1, 8, 128) f32 out, per-tile partial sum of squared error
                           (scalar broadcast to a vreg; wrapper reads [.., 0, 0])
    """
    has_pos = msk_ref[...] > 0.5

    # xy channels: render_pos with meshgrid fallback.  In the ablation path the
    # match xy equals the (detached) render xy, so its displacement is zero and
    # contributes nothing to the loss -- only the store is needed.
    render_pos = jnp.where(has_pos[None], (pos_ref[...] + 1.0) * 0.5,
                           mesh_ref[...])
    match_ref[3:5] = render_pos

    # rgb channels: target = clamp(gt, 0, 1); displacement vs rendered rgb.
    target_rgb = jnp.clip(gt_ref[...], 0.0, 1.0)
    match_ref[0:3] = target_rgb
    d = target_rgb - img_ref[...]
    partial = jnp.sum(d * d)          # single cross-lane reduction per tile

    loss_ref[...] = jnp.full((1, 8, 128), partial, dtype=jnp.float32)


def point_loss_forward(msk, pos, images, gt_rgb, mesh_pos, *, tile_h=None):
    """Channel-first entry point (avoids HBM-doubling layout transposes).

    msk      : (H, W)     bool / float mask ("haspos")
    pos      : (2, H, W)  f32 in [-1, 1]   (renderer 'pos', xy channels)
    images   : (3, H, W)  f32 rendered rgb
    gt_rgb   : (3, H, W)  f32 ground-truth rgb
    mesh_pos : (2, H, W)  f32 meshgrid positions in [0, 1]   (self.pos[view])

    Returns (loss: f32 scalar, match_point_5d: (5, H, W) f32).
    Channels-last callers should produce CHW upstream; transposing here would
    add a full HBM read+write per tensor (see perf review).
    """
    H, W = msk.shape
    if tile_h is None:
        tile_h = _pick_tile_h(H, W)
    assert H % tile_h == 0, (H, tile_h)
    num_tiles = H // tile_h

    msk_f = msk.astype(jnp.float32)
    pos = pos.astype(jnp.float32)
    images = images.astype(jnp.float32)
    gt_rgb = gt_rgb.astype(jnp.float32)
    mesh_pos = mesh_pos.astype(jnp.float32)

    match, partials = pl.pallas_call(
        point_loss_kernel,
        out_shape=(
            jax.ShapeDtypeStruct((5, H, W), jnp.float32),
            jax.ShapeDtypeStruct((num_tiles, 8, 128), jnp.float32),
        ),
        grid=(num_tiles,),
        in_specs=[
            pl.BlockSpec((tile_h, W), lambda i: (i, 0)),
            pl.BlockSpec((2, tile_h, W), lambda i: (0, i, 0)),
            pl.BlockSpec((3, tile_h, W), lambda i: (0, i, 0)),
            pl.BlockSpec((3, tile_h, W), lambda i: (0, i, 0)),
            pl.BlockSpec((2, tile_h, W), lambda i: (0, i, 0)),
        ],
        out_specs=(
            pl.BlockSpec((5, tile_h, W), lambda i: (0, i, 0)),
            pl.BlockSpec((1, 8, 128), lambda i: (i, 0, 0)),
        ),
        compiler_params=pltpu.CompilerParams(
            dimension_semantics=("parallel",),
            vmem_limit_bytes=_VMEM_LIMIT_BYTES,
        ),
    )(msk_f, pos, images, gt_rgb, mesh_pos)

    loss = jnp.sum(partials[:, 0, 0]) / jnp.float32(H * W * 5)
    return loss, match


def make_mesh_pos_chw(resolution):
    # torch: meshgrid(x, y) with 'ij' indexing, then cat([pos[1], pos[0]], -1).
    lin = jnp.linspace(0.0, 1.0, resolution)
    xx, yy = jnp.meshgrid(lin, lin, indexing="ij")   # xx = pos[0], yy = pos[1]
    return jnp.stack([yy, xx], axis=0)               # (2, res, res) channel-first


def _reference(msk_f, pos, images, gt_rgb, mesh_pos):
    """Plain-JAX reference mirroring the PyTorch forward (ablation path), CHW."""
    has_pos = msk_f > 0.5
    render_pos = (pos + 1.0) / 2.0
    render_pos = jnp.where(has_pos[None], render_pos, mesh_pos)
    render_point_5d = jnp.concatenate([images, render_pos], axis=0)
    match_point_5d = jnp.concatenate(
        [jnp.clip(gt_rgb, 0.0, 1.0), render_pos], axis=0)
    disp = match_point_5d - render_point_5d
    return jnp.mean(disp ** 2), match_point_5d


if __name__ == "__main__":
    key = jax.random.PRNGKey(0)
    resolution = 256                 # H = W; W is a multiple of 128 (lane-dense)
    H = W = resolution
    k1, k2, k3, k4 = jax.random.split(key, 4)

    # Synthetic deterministic "renderer" outputs (stand-in for renderer.render),
    # produced channel-first so no layout transposes are needed anywhere.
    msk = jax.random.uniform(k1, (H, W)) > 0.3
    pos = jax.random.uniform(k2, (2, H, W), minval=-1.0, maxval=1.0)
    images = jax.random.uniform(k3, (3, H, W))
    gt_rgb = jax.random.uniform(k4, (3, H, W), minval=-0.2, maxval=1.2)
    mesh_pos = make_mesh_pos_chw(resolution)

    # tile_h=64 -> 4 grid steps: exercises the row-tiled, parallel pipeline.
    loss, match_point_5d = point_loss_forward(
        msk, pos, images, gt_rgb, mesh_pos, tile_h=64)
    jax.block_until_ready((loss, match_point_5d))

    ref_loss, ref_match = _reference(
        msk.astype(jnp.float32), pos, images, gt_rgb, mesh_pos)

    assert jnp.allclose(loss, ref_loss, atol=1e-6, rtol=2e-5), (loss, ref_loss)
    assert jnp.allclose(match_point_5d, ref_match, atol=1e-6, rtol=1e-6)

    print("KERNEL_OK")
</pallas_src>

<mosaic_0001>
module attributes {stable_mosaic.version = 11 : i64} {
  func.func @point_loss_kernel(%arg0: i32, %arg1: memref<64x256xf32, #tpu.memory_space<vmem>>, %arg2: memref<2x64x256xf32, #tpu.memory_space<vmem>>, %arg3: memref<3x64x256xf32, #tpu.memory_space<vmem>>, %arg4: memref<3x64x256xf32, #tpu.memory_space<vmem>>, %arg5: memref<2x64x256xf32, #tpu.memory_space<vmem>>, %arg6: memref<5x64x256xf32, #tpu.memory_space<vmem>>, %arg7: memref<1x8x128xf32, #tpu.memory_space<vmem>>) attributes {dimension_semantics = [#tpu.dimension_semantics<parallel>], iteration_bounds = array<i64: 4>, scalar_prefetch = 0 : i64, scratch_operands = 0 : i64, tpu.core_type = #tpu.core_type<tc>, window_params = [{transform_indices = @transform_0, window_bounds = array<i64: 64, 256>}, {transform_indices = @transform_1, window_bounds = array<i64: 2, 64, 256>}, {transform_indices = @transform_2, window_bounds = array<i64: 3, 64, 256>}, {transform_indices = @transform_3, window_bounds = array<i64: 3, 64, 256>}, {transform_indices = @transform_4, window_bounds = array<i64: 2, 64, 256>}, {transform_indices = @transform_5, window_bounds = array<i64: 5, 64, 256>}, {transform_indices = @transform_6, window_bounds = array<i64: 1, 8, 128>}]} {
    %c0 = arith.constant 0 : index
    %c0_0 = arith.constant 0 : index
    %0 = vector.load %arg1[%c0, %c0_0] : memref<64x256xf32, #tpu.memory_space<vmem>>, vector<64x256xf32>
    %cst = arith.constant 5.000000e-01 : f32
    %1 = vector.broadcast %cst : f32 to vector<64x256xf32>
    %2 = arith.cmpf ogt, %0, %1 : vector<64x256xf32>
    %3 = vector.shape_cast %2 : vector<64x256xi1> to vector<1x64x256xi1>
    %c0_1 = arith.constant 0 : index
    %c0_2 = arith.constant 0 : index
    %c0_3 = arith.constant 0 : index
    %4 = vector.load %arg2[%c0_1, %c0_2, %c0_3] : memref<2x64x256xf32, #tpu.memory_space<vmem>>, vector<2x64x256xf32>
    %cst_4 = arith.constant 1.000000e+00 : f32
    %5 = vector.broadcast %cst_4 : f32 to vector<2x64x256xf32>
    %6 = arith.addf %4, %5 : vector<2x64x256xf32>
    %cst_5 = arith.constant 5.000000e-01 : f32
    %7 = vector.broadcast %cst_5 : f32 to vector<2x64x256xf32>
    %8 = arith.mulf %6, %7 : vector<2x64x256xf32>
    %c0_6 = arith.constant 0 : index
    %c0_7 = arith.constant 0 : index
    %c0_8 = arith.constant 0 : index
    %9 = vector.load %arg5[%c0_6, %c0_7, %c0_8] : memref<2x64x256xf32, #tpu.memory_space<vmem>>, vector<2x64x256xf32>
    %10 = vector.shape_cast %3 : vector<1x64x256xi1> to vector<1x64x256xi1>
    %11 = vector.broadcast %10 : vector<1x64x256xi1> to vector<2x64x256xi1>
    %12 = arith.select %11, %8, %9 : vector<2x64x256xi1>, vector<2x64x256xf32>
    %c3 = arith.constant 3 : index
    %c0_9 = arith.constant 0 : index
    %c0_10 = arith.constant 0 : index
    %13 = vector.load %arg6[%c3, %c0_9, %c0_10] : memref<5x64x256xf32, #tpu.memory_space<vmem>>, vector<2x64x256xf32>
    tpu.vector_store %arg6[%c3, %c0_9, %c0_10], %12 {strides = array<i32>} : memref<5x64x256xf32, #tpu.memory_space<vmem>>, vector<2x64x256xf32>,
    %c0_11 = arith.constant 0 : index
    %c0_12 = arith.constant 0 : index
    %c0_13 = arith.constant 0 : index
    %14 = vector.load %arg4[%c0_11, %c0_12, %c0_13] : memref<3x64x256xf32, #tpu.memory_space<vmem>>, vector<3x64x256xf32>
    %cst_14 = arith.constant 0.000000e+00 : f32
    %cst_15 = arith.constant 1.000000e+00 : f32
    %15 = vector.broadcast %cst_14 : f32 to vector<3x64x256xf32>
    %16 = arith.maximumf %15, %14 : vector<3x64x256xf32>
    %17 = vector.broadcast %cst_15 : f32 to vector<3x64x256xf32>
    %18 = arith.minimumf %17, %16 : vector<3x64x256xf32>
    %c0_16 = arith.constant 0 : index
    %c0_17 = arith.constant 0 : index
    %c0_18 = arith.constant 0 : index
    %19 = vector.load %arg6[%c0_16, %c0_17, %c0_18] : memref<5x64x256xf32, #tpu.memory_space<vmem>>, vector<3x64x256xf32>
    tpu.vector_store %arg6[%c0_16, %c0_17, %c0_18], %18 {strides = array<i32>} : memref<5x64x256xf32, #tpu.memory_space<vmem>>, vector<3x64x256xf32>,
    %c0_19 = arith.constant 0 : index
    %c0_20 = arith.constant 0 : index
    %c0_21 = arith.constant 0 : index
    %20 = vector.load %arg3[%c0_19, %c0_20, %c0_21] : memref<3x64x256xf32, #tpu.memory_space<vmem>>, vector<3x64x256xf32>
    %21 = arith.subf %18, %20 : vector<3x64x256xf32>
    %22 = arith.mulf %21, %21 : vector<3x64x256xf32>
    %23 = vector.shape_cast %22 : vector<3x64x256xf32> to vector<1x3x64x256xf32>
    %cst_22 = arith.constant dense<0.000000e+00> : vector<1xf32>
    %24 = vector.multi_reduction <add>, %23, %cst_22 [1, 2, 3] : vector<1x3x64x256xf32> to vector<1xf32>
    %25 = vector.shape_cast %24 : vector<1xf32> to vector<1x1x1x1xf32>
    %26 = vector.extract %25[0, 0, 0, 0] : f32 from vector<1x1x1x1xf32>
    %27 = vector.broadcast %26 : f32 to vector<1x8x128xf32>
    %c0_23 = arith.constant 0 : index
    %c0_24 = arith.constant 0 : index
    %c0_25 = arith.constant 0 : index
    %28 = vector.load %arg7[%c0_23, %c0_24, %c0_25] : memref<1x8x128xf32, #tpu.memory_space<vmem>>, vector<1x8x128xf32>
    tpu.vector_store %arg7[%c0_23, %c0_24, %c0_25], %27 {strides = array<i32>} : memref<1x8x128xf32, #tpu.memory_space<vmem>>, vector<1x8x128xf32>,
    return
  }
  func.func @transform_0(%arg0: i32) -> (i32, i32) {
    %c0_i32 = arith.constant 0 : i32
    %c0_i32_0 = arith.constant 0 : i32
    return %arg0, %c0_i32 : i32, i32
  }
  func.func @transform_1(%arg0: i32) -> (i32, i32, i32) {
    %c0_i32 = arith.constant 0 : i32
    %c0_i32_0 = arith.constant 0 : i32
    %c0_i32_1 = arith.constant 0 : i32
    return %c0_i32, %arg0, %c0_i32_0 : i32, i32, i32
  }
  func.func @transform_2(%arg0: i32) -> (i32, i32, i32) {
    %c0_i32 = arith.constant 0 : i32
    %c0_i32_0 = arith.constant 0 : i32
    %c0_i32_1 = arith.constant 0 : i32
    return %c0_i32, %arg0, %c0_i32_0 : i32, i32, i32
  }
  func.func @transform_3(%arg0: i32) -> (i32, i32, i32) {
    %c0_i32 = arith.constant 0 : i32
    %c0_i32_0 = arith.constant 0 : i32
    %c0_i32_1 = arith.constant 0 : i32
    return %c0_i32, %arg0, %c0_i32_0 : i32, i32, i32
  }
  func.func @transform_4(%arg0: i32) -> (i32, i32, i32) {
    %c0_i32 = arith.constant 0 : i32
    %c0_i32_0 = arith.constant 0 : i32
    %c0_i32_1 = arith.constant 0 : i32
    return %c0_i32, %arg0, %c0_i32_0 : i32, i32, i32
  }
  func.func @transform_5(%arg0: i32) -> (i32, i32, i32) {
    %c0_i32 = arith.constant 0 : i32
    %c0_i32_0 = arith.constant 0 : i32
    %c0_i32_1 = arith.constant 0 : i32
    return %c0_i32, %arg0, %c0_i32_0 : i32, i32, i32
  }
  func.func @transform_6(%arg0: i32) -> (i32, i32, i32) {
    %c0_i32 = arith.constant 0 : i32
    %c0_i32_0 = arith.constant 0 : i32
    %c0_i32_1 = arith.constant 0 : i32
    return %arg0, %c0_i32, %c0_i32_0 : i32, i32, i32
  }
}

</mosaic_0001>

<bundles_post_ra>
// kernel: tpu_custom_call.1
= control target key start
LH: loop header
LB: loop body
LE: loop exit
PB: predicated region body
PF: predicated region fallthrough
CT: control target
= control target key end

     0   :  { %s3045_s0 = inlined_call_operand.hbm [shape: f32[256,256], index: 0, kind: input, shape index: {}]   ;;  %s3046_s1 = inlined_call_operand.hbm [shape: f32[2,256,256], index: 1, kind: input, shape index: {}]   ;;  %s3047_s2 = inlined_call_operand.hbm [shape: f32[3,256,256], index: 2, kind: input, shape index: {}]   ;;  %s3048_s3 = inlined_call_operand.hbm [shape: f32[3,256,256], index: 3, kind: input, shape index: {}]   ;;  %s3049_s4 = inlined_call_operand.hbm [shape: f32[2,256,256], index: 4, kind: input, shape index: {}]   ;;  %s3050_s5 = inlined_call_operand.hbm [shape: f32[5,256,256], index: 5, kind: output, shape index: {0}]   ;;  %s3051_s6 = inlined_call_operand.hbm [shape: f32[4,8,128], index: 6, kind: output, shape index: {1}]  }
   0x1   :  { %3054 = sst [smem:[#allocation44_spill]] %s3045_s0 }
   0x2   :  { %3055 = sst [smem:[#allocation45_spill]] %s3046_s1 }
   0x3   :  { %3056 = sst [smem:[#allocation46_spill]] %s3047_s2 }
   0x4   :  { %12 = vsyncpa [#allocation3], 0 }
   0x5   :  { %14 = vsyncpa [#allocation3 + $0x1], 0 }
   0x6   :  { %15 = vsyncpa [#allocation6], 0 }
   0x7   :  { %17 = vsyncpa [#allocation6 + $0x1], 0 }
   0x8   :  { %18 = vsyncpa [#allocation9], 0 }
   0x9   :  { %20 = vsyncpa [#allocation9 + $0x1], 0 }
   0xa   :  { %21 = vsyncpa [#allocation4], 0 }
   0xb   :  { %23 = vsyncpa [#allocation4 + $0x1], 0 }
   0xc   :  { %24 = vsyncpa [#allocation13], 0 }
   0xd   :  { %26 = vsyncpa [#allocation13 + $0x1], 0  ;;  %s1840_s21 = smov 0   ;;  %s1842_s22 = smov 0  }
   0xe   :  { %s1844_s23 = smov 0   ;;  %s1846_s24 = smov 0  }
   0xf LB: > { %s1861_s25 = sadd.s32 4294967295, %s1768_s24   ;;  %s1450_s26 = sadd.s32 4294967294, %s1768_s24   ;;  %s1768_s24 = sphi %s1846_s24, %s3130_s24   ;;  %s1764_s23 = sphi %s1844_s23, %s3129_s23   ;;  %s1760_s22 = sphi %s1842_s22, %s3128_s22   ;;  %s1756_s21 = sphi %s1840_s21, %s3127_s21  }
  0x10   : > { %s1865_s27 = sadd.s32 1, %s1768_s24   ;;  %s39_s28 = sadd.s32 1, %s1764_s23 }
  0x11   : > { %s36_s29 = ssub.s32 %s1768_s24, %s1865_s27  ;;  %p46_p0 = scmp.ne.s32.totalorder %s1764_s23, %s1760_s22 }
  0x12   : > { %p37_p1 = scmp.eq.s32.totalorder %s36_s29, 0  ;;  %p47_p2 = scmp.eq.s32.totalorder %s1768_s24, 0 }
  0x13   : > { %p52_p3 = scmp.ne.s32.totalorder %s1760_s22, %s1756_s21  ;;  %p53_p4 = scmp.eq.s32.totalorder %s1861_s25, 0 }
  0x14   : > { %s1877_s30 = scalar_select %p37_p1, %s1764_s23, %s39_s28  }
  0x15   : > { %p1879_p5 = por %p47_p2, %p46_p0  ;;  %p1883_p6 = por %p53_p4, %p52_p3 }
  0x16   : > { %p180_p7 = scmp.eq.s32.totalorder %s1861_s25, 3  ;;  %p186_p8 = scmp.eq.s32.totalorder %s1450_s26, 3 }
  0x17   : > { %p1452_p11 = scmp.ge.s32.totalorder %s1768_s24, 4 }
  0x18   : > { %p1888_p9 = por %p180_p7, %p46_p0  ;;  %p1892_p10 = por %p186_p8, %p52_p3 }
  0x19   : > { %228 = sbr.rel (%p1452_p11) target bundleno = 107 (0x6b), region = 16  ;;  %s1898_s11 = sand.u32 (!%p1452_p11), 1, %s1764_s23  }
  0x1a   : > { %s3059_s9 = scalar_select %p1888_p9, 1, 0 }
  0x1b   : > { %s3060_s10 = scalar_select %p1892_p10, 1, 0 }
  0x1c   : > { %s1901_s12 = sshll.u32 (!%p1452_p11), %s1768_s24, 11  ;;  %s1453_s13 = sshll.u32 (!%p1452_p11), %s1898_s11, 7 }
  0x1d   : > { %s3061_s0 = sld [smem:[#allocation44_spill]] (!%p1452_p11)  ;;  %s236_s17 = scalar_lea.vmem (!%p1452_p11), [#allocation2], %s1453_s13 }
  0x1e   : > { %s244_s18 = sshll.u32 (!%p1452_p11), %s236_s17, 4  ;;  %s233_s19 = scalar_lea.sflag (!%p1452_p11), [#allocation3], %s1898_s11  ;;  %s1910_s18 = int_to_ptr.vmem [resolvable:$true] %s244_s18 }
  0x23   : > { %s1908_s16 = scalar_lea.hbm %s3061_s0, %s1901_s12  ;;  %s1666_s29 = scalar_lea.hbm %s3061_s0, 8192 }
  0x24   : > { %s1662_s20 = scalar_lea.hbm %s1908_s16, 2048  ;;  %p1667_p1 = scmp.lt.u32.totalorder %s1908_s16, %s3061_s0 }
  0x25   : > { %p1663_p12 = scmp.ne.s32.totalorder %s1908_s16, %s1662_s20  ;;  %p1668_p2 = scmp.lt.u32.totalorder %s1666_s29, %s1662_s20 }
  0x26   : > { %p1670_p4 = scmp.lt.u32.totalorder %s1662_s20, %s1908_s16 }
  0x27   : > { %p1664_p13 = pnand %p1663_p12, %p1879_p5  ;;  %p1669_p3 = por %p1668_p2, %p1667_p1 }
  0x29   : > { %p1665_p0 = pneg %p1664_p13  ;;  %p1671_p7 = por %p1670_p4, %p1669_p3 }
  0x2b   : > { %p1672_p8 = pnand %p1671_p7, %p1665_p0 }
  0x2d   : > { %1675 = shalt.err (!%p1672_p8)
}
  0x2e   : > { %s1676_s13 = scalar_lea.vmem %s1910_s18, 2048  ;;  %s1770_s17 = smov [#allocation2]  }
  0x2f   : > { %p1677_p11 = scmp.ne.s32.totalorder %s1910_s18, %s1676_s13  ;;  %s1680_s26 = sshll.u32 %s1770_s17, 4  ;;  %s1681_s26 = int_to_ptr.vmem [resolvable:$false] %s1680_s26 }
  0x30   : > { %s1682_s28 = scalar_lea.vmem %s1681_s26, 4096  ;;  %p1683_p10 = scmp.lt.s32.totalorder %s1910_s18, %s1681_s26 }
  0x31   : > { %p1678_p12 = pnand %p1677_p11, %p1879_p5  ;;  %p1684_p9 = scmp.lt.s32.totalorder %s1682_s28, %s1676_s13 }
  0x33   : > { %p1679_p13 = pneg %p1678_p12  ;;  %p1685_p1 = por %p1684_p9, %p1683_p10 }
  0x35   : > { %p1686_p2 = pnand %p1685_p1, %p1679_p13 }
  0x37   : > { %1689 = shalt.err (!%p1686_p2)
}
  0x38   : > { %s1771_s20 = smov 256   ;;  %s1772_s29 = smov 16  }
  0x39   : > { %1541 = dma.hbm_to_vmem [thread:$0]  (%p1879_p5), %s1908_s16, 2048, %s1910_s18, %s233_s19, %s1771_s20, %s1771_s20, %s1772_s29  }
  0x3a   : > { %s3053_s15 = sshll.u32 %s1898_s11, 8  ;;  %s3062_s1 = sld [smem:[#allocation45_spill]] }
  0x3b   : > { %s1542_s28 = scalar_select %p1879_p5, [#allocation0], [#allocation24] }
  0x3c   : > { %s258_s16 = scalar_lea.vmem [#allocation5], %s3053_s15  ;;  %s1773_s20 = smov 8192  }
  0x3d   : > { %s278_s18 = sshll.u32 %s258_s16, 4  ;;  %s270_s19 = sld [smem:[%s1542_s28]]   ;;  %s279_s18 = int_to_ptr.vmem [resolvable:$true] %s278_s18 }
  0x3e   : > { %1543 = sst [smem:[#allocation15]] (%p1879_p5), %s1773_s20  ;;  %s1774_s29 = smov 2048  }
  0x3f   : > { %1544 = sst [smem:[#allocation15 + $0x1]] (%p1879_p5), %s1774_s29  ;;  %s1775_s14 = smov 8  }
  0x40   : > { %s265_s26 = scalar_lea.hbm %s3062_s1, %s1901_s12  ;;  %1545 = sst [smem:[#allocation15 + $0x2]] (%p1879_p5), %s1775_s14 }
  0x41   : > { %s1776_s13 = smov 256   ;;  %s1777_s16 = smov 16  }
  0x42   : > { %1546 = sst [smem:[#allocation15 + $0x3]] (%p1879_p5), %s1776_s13  ;;  %s3063_s15 = sand.u32 1, %s1768_s24  }
  0x43   : > { %1547 = sst [smem:[#allocation15 + $0x4]] (%p1879_p5), %s1776_s13  ;;  %s1461_s17 = sshll.u32 %s270_s19, 26 }
  0x44   : > { %1548 = sst [smem:[#allocation15 + $0x5]] (%p1879_p5), %s1777_s16  ;;  %s1462_s28 = sadd.s32 134217728, %s1461_s17 }
  0x45   : > { %s255_s0 = scalar_lea.sflag [#allocation6], %s3063_s15  ;;  %s1778_s20 = smov [#allocation14]  }
  0x46   : > { %1549 = dma.general (%p1879_p5), %s265_s26, 4096, %s279_s18, %s255_s0, %s1778_s20, [#allocation15], %s1462_s28, 0  }
  0x47   : > { %s1535_s14 = smul.u32 384, %s1898_s11  ;;  %s3064_s2 = sld [smem:[#allocation46_spill]] }
  0x48   : > { %s1550_s17 = scalar_select %p1879_p5, [#allocation0], [#allocation25] }
  0x49   : > { %s305_s15 = scalar_lea.vmem [#allocation7], %s1535_s14  ;;  %s1779_s26 = smov 8192  }
  0x4a   : > { %s317_s16 = sld [smem:[%s1550_s17]]   ;;  %s325_s1 = sshll.u32 %s305_s15, 4  ;;  %s326_s1 = int_to_ptr.vmem [resolvable:$true] %s325_s1 }
  0x4b   : > { %1551 = sst [smem:[#allocation17]] (%p1879_p5), %s1779_s26  ;;  %s1780_s18 = smov 2048  }
  0x4c   : > { %1552 = sst [smem:[#allocation17 + $0x1]] (%p1879_p5), %s1780_s18  ;;  %s1781_s28 = smov 8  }
  0x4d   : > { %s312_s19 = scalar_lea.hbm %s3064_s2, %s1901_s12  ;;  %1553 = sst [smem:[#allocation17 + $0x2]] (%p1879_p5), %s1781_s28 }
  0x4e   : > { %s1782_s20 = smov 256   ;;  %s1783_s17 = smov 16  }
  0x4f   : > { %1554 = sst [smem:[#allocation17 + $0x3]] (%p1879_p5), %s1782_s20  ;;  %s1784_s15 = smov [#allocation16]  }
  0x50   : > { %s1466_s29 = sshll.u32 %s317_s16, 26  ;;  %1555 = sst [smem:[#allocation17 + $0x4]] (%p1879_p5), %s1782_s20 }
  0x51   : > { %s1467_s13 = sadd.s32 134217728, %s1466_s29  ;;  %1556 = sst [smem:[#allocation17 + $0x5]] (%p1879_p5), %s1783_s17 }
  0x52   : > { %1557 = dma.general (%p1879_p5), %s312_s19, 6144, %s326_s1, %s255_s0, %s1784_s15, [#allocation17], %s1467_s13, 0  }
  0x53   : > { %s359_s16 = scalar_lea.hbm %s3048_s3, %s1901_s12  ;;  %s352_s28 = scalar_lea.vmem [#allocation8], %s1535_s14 }
  0x54   : > { %s1558_s18 = scalar_select %p1879_p5, [#allocation0], [#allocation26] }
  0x55   : > { %s372_s20 = sshll.u32 %s352_s28, 4  ;;  %s1785_s17 = smov 8192   ;;  %s373_s20 = int_to_ptr.vmem [resolvable:$true] %s372_s20 }
  0x56   : > { %s364_s29 = sld [smem:[%s1558_s18]]   ;;  %s1786_s0 = smov 2048  }
  0x57   : > { %1559 = sst [smem:[#allocation19]] (%p1879_p5), %s1785_s17  ;;  %s1787_s1 = smov 8  }
  0x58   : > { %1560 = sst [smem:[#allocation19 + $0x1]] (%p1879_p5), %s1786_s0  ;;  %s1788_s2 = smov 256  }
  0x59   : > { %1561 = sst [smem:[#allocation19 + $0x2]] (%p1879_p5), %s1787_s1  ;;  %s1789_s19 = smov 16  }
  0x5a   : > { %1562 = sst [smem:[#allocation19 + $0x3]] (%p1879_p5), %s1788_s2  ;;  %s3065_s15 = sand.u32 1, %s1768_s24  }
  0x5b   : > { %1563 = sst [smem:[#allocation19 + $0x4]] (%p1879_p5), %s1788_s2  ;;  %s349_s26 = scalar_lea.sflag [#allocation9], %s3065_s15 }
  0x5c   : > { %s1471_s14 = sshll.u32 %s364_s29, 26  ;;  %1564 = sst [smem:[#allocation19 + $0x5]] (%p1879_p5), %s1789_s19 }
  0x5d   : > { %s1472_s13 = sadd.s32 134217728, %s1471_s14  ;;  %s1790_s18 = smov [#allocation18]  }
  0x5e   : > { %1565 = dma.general (%p1879_p5), %s359_s16, 6144, %s373_s20, %s349_s26, %s1790_s18, [#allocation19], %s1472_s13, 0  }
  0x5f   : > { %s406_s29 = scalar_lea.hbm %s3049_s4, %s1901_s12  ;;  %s3066_s1 = sshll.u32 %s1898_s11, 8 }
  0x60   : > { %s1566_s0 = scalar_select %p1879_p5, [#allocation0], [#allocation27] }
  0x61   : > { %s399_s2 = scalar_lea.vmem [#allocation10], %s3066_s1  ;;  %s1791_s16 = smov 8192  }
  0x62   : > { %s419_s14 = sshll.u32 %s399_s2, 4  ;;  %s411_s19 = sld [smem:[%s1566_s0]]   ;;  %s420_s14 = int_to_ptr.vmem [resolvable:$true] %s419_s14 }
  0x63   : > { %1567 = sst [smem:[#allocation21]] (%p1879_p5), %s1791_s16  ;;  %s1792_s20 = smov 2048  }
  0x64   : > { %1568 = sst [smem:[#allocation21 + $0x1]] (%p1879_p5), %s1792_s20  ;;  %s1793_s13 = smov 8  }
  0x65   : > { %1569 = sst [smem:[#allocation21 + $0x2]] (%p1879_p5), %s1793_s13  ;;  %s1794_s15 = smov 256  }
  0x66   : > { %1570 = sst [smem:[#allocation21 + $0x3]] (%p1879_p5), %s1794_s15  ;;  %s1795_s12 = smov 16  }
  0x67   : > { %1571 = sst [smem:[#allocation21 + $0x4]] (%p1879_p5), %s1794_s15  ;;  %s1796_s28 = smov [#allocation20]  }
  0x68   : > { %s1477_s11 = sshll.u32 %s411_s19, 26  ;;  %1572 = sst [smem:[#allocation21 + $0x5]] (%p1879_p5), %s1795_s12 }
  0x69   : > { %s1478_s18 = sadd.s32 134217728, %s1477_s11 }
  0x6a   : > { %1573 = dma.general (%p1879_p5), %s406_s29, 4096, %s420_s14, %s349_s26, %s1796_s28, [#allocation21], %s1478_s18, 0  }
  0x6b PF: > { %p1479_p9 = scmp.ge.s32.totalorder %s1768_s24, 1  ;;  %p440_p10 = scmp.lt.s32.totalorder %s1768_s24, 5 }
  0x6d   : > { %p441_p0 = pnand %p1479_p9, %p440_p10 }
  0x6f   : > { %444 = sbr.rel (%p441_p0) target bundleno = 536 (0x218), region = 40 }
  0x76   : > { %s2030_s17 = sand.u32 1, %s1760_s22  }
  0x77   : > { %s1480_s0 = sshll.u32 %s2030_s17, 7  ;;  %s447_s1 = scalar_lea.sflag [#allocation3], %s2030_s17 }
  0x78   : > { %s2034_s2 = scalar_lea.vmem [#allocation2], %s1480_s0 }
  0x79   : > { %1735 = dma.done.wait (%p1883_p6), %s447_s1, 2048  }
  0x7a   : > { %1737 = vsyncadd (%p1883_p6), %s447_s1, 4294965248  ;;  %s455_s7 = sand.u32 1, %s1861_s25   ;;  %s1481_s26 = sshll.u32 %s2030_s17, 8 }
  0x7b   : > { %s456_s29 = scalar_lea.sflag [#allocation6], %s455_s7  ;;  %s2044_s14 = scalar_lea.vmem [#allocation5], %s1481_s26 }
  0x7c   : > { %1739 = dma.done.wait (%p1883_p6), %s456_s29, 10240  }
  0x7d   : > { %1741 = vsyncadd (%p1883_p6), %s456_s29, 4294957056  ;;  %s1537_s19 = smul.u32 384, %s2030_s17  ;;  %s474_s20 = scalar_lea.sflag [#allocation9], %s455_s7 }
  0x7f   : > { %s2051_s16 = scalar_lea.vmem [#allocation7], %s1537_s19  ;;  %s2053_s13 = scalar_lea.vmem [#allocation8], %s1537_s19 }
  0x80   : > { %1743 = dma.done.wait (%p1883_p6), %s474_s20, 10240  }
  0x81   : > { %1745 = vsyncadd (%p1883_p6), %s474_s20, 4294957056  ;;  %v578_v0 = vld [vmem:[%s2044_s14] sm:$0xff]  ;;  %v579_v1 = vld [vmem:[%s2044_s14 + $0x8] sm:$0xff]  ;;  %s1538_s15 = smul.u32 640, %s2030_s17  ;;  %s2213_s8 = scalar_lea.vmem [#allocation10], %s1481_s26 }
  0x82   : > { %v580_v2 = vld [vmem:[%s2044_s14 + $0x10] sm:$0xff]  ;;  %v581_v3 = vld [vmem:[%s2044_s14 + $0x18] sm:$0xff]  ;;  %v582_v4 = vld [vmem:[%s2044_s14 + $0x20] sm:$0xff]  ;;  %v2065_v5 = vadd.f32 1.0, %v578_v0  ;;  %v2067_v6 = vadd.f32 1.0, %v579_v1  ;;  %s1483_s12 = sshll.u32 %s2030_s17, 3 }
  0x83   : > { %v583_v7 = vld [vmem:[%s2044_s14 + $0x28] sm:$0xff]  ;;  %v584_v8 = vld [vmem:[%s2044_s14 + $0x30] sm:$0xff]  ;;  %v585_v9 = vld [vmem:[%s2044_s14 + $0x38] sm:$0xff]  ;;  %v2072_v10 = vadd.f32 1.0, %v580_v2  ;;  %v2074_v11 = vadd.f32 1.0, %v581_v3  ;;  %v2076_v12 = vadd.f32 1.0, %v582_v4 }
  0x84   : > { %v2079_v13 = vld [vmem:[%s2034_s2] sm:$0xff]  ;;  %v587_v15 = vld [vmem:[%s2044_s14 + $0x48] sm:$0xff]  ;;  %v588_v16 = vld [vmem:[%s2044_s14 + $0x50] sm:$0xff]  ;;  %v2084_v17 = vadd.f32 1.0, %v583_v7  ;;  %v2086_v18 = vadd.f32 1.0, %v584_v8  ;;  %v2088_v19 = vadd.f32 1.0, %v585_v9 }
  0x85   : > { %v586_v14 = vld [vmem:[%s2044_s14 + $0x40] sm:$0xff]  ;;  %v2091_v20 = vld [vmem:[%s2034_s2 + $0x8] sm:$0xff]  ;;  %v2094_v21 = vld [vmem:[%s2034_s2 + $0x10] sm:$0xff]  ;;  %v2107_v28 = vadd.f32 1.0, %v587_v15  ;;  %v2109_v29 = vadd.f32 1.0, %v588_v16  ;;  %vm562_vm0 = vcmp.gt.f32.partialorder %v2079_v13, 0.5 }
  0x86   : > { %v2097_v22 = vld [vmem:[%s2034_s2 + $0x18] sm:$0xff]  ;;  %v2100_v23 = vld [vmem:[%s2034_s2 + $0x20] sm:$0xff]  ;;  %v591_v26 = vld [vmem:[%s2044_s14 + $0x68] sm:$0xff]  ;;  %v2105_v27 = vadd.f32 1.0, %v586_v14  ;;  %vm563_vm1 = vcmp.gt.f32.partialorder %v2091_v20, 0.5  ;;  %vm564_vm2 = vcmp.gt.f32.partialorder %v2094_v21, 0.5 }
  0x87   : > { %v589_v24 = vld [vmem:[%s2044_s14 + $0x58] sm:$0xff]  ;;  %v590_v25 = vld [vmem:[%s2044_s14 + $0x60] sm:$0xff]  ;;  %v2112_v30 = vld [vmem:[%s2034_s2 + $0x28] sm:$0xff]  ;;  %v2130_v39 = vadd.f32 1.0, %v591_v26  ;;  %vm565_vm3 = vcmp.gt.f32.partialorder %v2097_v22, 0.5  ;;  %vm566_vm4 = vcmp.gt.f32.partialorder %v2100_v23, 0.5 }
  0x88   : > { %v2115_v31 = vld [vmem:[%s2034_s2 + $0x30] sm:$0xff]  ;;  %v2118_v32 = vld [vmem:[%s2034_s2 + $0x38] sm:$0xff]  ;;  %v2121_v33 = vld [vmem:[%s2034_s2 + $0x40] sm:$0xff]  ;;  %v2126_v37 = vadd.f32 1.0, %v589_v24  ;;  %v2128_v38 = vadd.f32 1.0, %v590_v25  ;;  %vm567_vm5 = vcmp.gt.f32.partialorder %v2112_v30, 0.5 }
  0x89   : > { %v592_v34 = vld [vmem:[%s2044_s14 + $0x70] sm:$0xff]  ;;  %v593_v35 = vld [vmem:[%s2044_s14 + $0x78] sm:$0xff]  ;;  %v594_v36 = vld [vmem:[%s2044_s14 + $0x80] sm:$0xff]  ;;  %vm568_vm6 = vcmp.gt.f32.partialorder %v2115_v31, 0.5  ;;  %vm569_vm7 = vcmp.gt.f32.partialorder %v2118_v32, 0.5  ;;  %vm570_vm8 = vcmp.gt.f32.partialorder %v2121_v33, 0.5 }
  0x8a   : > { %v2133_v40 = vld [vmem:[%s2034_s2 + $0x48] sm:$0xff]  ;;  %v2136_v41 = vld [vmem:[%s2034_s2 + $0x50] sm:$0xff]  ;;  %v2139_v42 = vld [vmem:[%s2034_s2 + $0x58] sm:$0xff]  ;;  %v2147_v47 = vadd.f32 1.0, %v592_v34  ;;  %v2149_v48 = vadd.f32 1.0, %v593_v35  ;;  %v2151_v49 = vadd.f32 1.0, %v594_v36 }
  0x8b   : > { %v2142_v43 = vld [vmem:[%s2034_s2 + $0x60] sm:$0xff]  ;;  %v595_v44 = vld [vmem:[%s2044_s14 + $0x88] sm:$0xff]  ;;  %v596_v45 = vld [vmem:[%s2044_s14 + $0x90] sm:$0xff]  ;;  %vm571_vm9 = vcmp.gt.f32.partialorder %v2133_v40, 0.5  ;;  %vm572_vm10 = vcmp.gt.f32.partialorder %v2136_v41, 0.5  ;;  %vm573_vm11 = vcmp.gt.f32.partialorder %v2139_v42, 0.5 }
  0x8c   : > { %v597_v46 = vld [vmem:[%s2044_s14 + $0x98] sm:$0xff]  ;;  %v2154_v50 = vld [vmem:[%s2034_s2 + $0x68] sm:$0xff]  ;;  %v2157_v51 = vld [vmem:[%s2034_s2 + $0x70] sm:$0xff]  ;;  %v627_v56 = vadd.f32 1.0, %v595_v44  ;;  %v628_v57 = vadd.f32 1.0, %v596_v45  ;;  %vm574_vm12 = vcmp.gt.f32.partialorder %v2142_v43, 0.5 }
  0x8d   : > { %v2160_v52 = vld [vmem:[%s2034_s2 + $0x78] sm:$0xff]  ;;  %v598_v53 = vld [vmem:[%s2044_s14 + $0xa0] sm:$0xff]  ;;  %v599_v54 = vld [vmem:[%s2044_s14 + $0xa8] sm:$0xff]  ;;  %v629_v58 = vadd.f32 1.0, %v597_v46  ;;  %v642_v36 = vmul.f32 0.5, %v2065_v5  ;;  %vm575_vm13 = vcmp.gt.f32.partialorder %v2154_v50, 0.5 }
  0x8e   : > { %v600_v55 = vld [vmem:[%s2044_s14 + $0xb0] sm:$0xff]  ;;  %v601_v59 = vld [vmem:[%s2044_s14 + $0xb8] sm:$0xff]  ;;  %v602_v60 = vld [vmem:[%s2044_s14 + $0xc0] sm:$0xff]  ;;  %v630_v62 = vadd.f32 1.0, %v598_v53  ;;  %v631_v63 = vadd.f32 1.0, %v599_v54  ;;  %vm576_vm14 = vcmp.gt.f32.partialorder %v2157_v51, 0.5 }
  0x8f   : > { %v603_v61 = vld [vmem:[%s2044_s14 + $0xc8] sm:$0xff]  ;;  %v632_v0 = vadd.f32 1.0, %v600_v55  ;;  %v604_v1 = vld [vmem:[%s2044_s14 + $0xd0] sm:$0xff]  ;;  %v605_v2 = vld [vmem:[%s2044_s14 + $0xd8] sm:$0xff]  ;;  %v633_v4 = vadd.f32 1.0, %v601_v59  ;;  %v634_v7 = vadd.f32 1.0, %v602_v60 }
  0x90   : > { %v606_v3 = vld [vmem:[%s2044_s14 + $0xe0] sm:$0xff]  ;;  %v635_v8 = vadd.f32 1.0, %v603_v61  ;;  %v607_v9 = vld [vmem:[%s2044_s14 + $0xe8] sm:$0xff]  ;;  %v608_v14 = vld [vmem:[%s2044_s14 + $0xf0] sm:$0xff]  ;;  %v636_v16 = vadd.f32 1.0, %v604_v1  ;;  %v637_v24 = vadd.f32 1.0, %v605_v2 }
  0x91   : > { %v609_v15 = vld [vmem:[%s2044_s14 + $0xf8] sm:$0xff]  ;;  %v638_v25 = vadd.f32 1.0, %v606_v3  ;;  %v639_v26 = vadd.f32 1.0, %v607_v9  ;;  %v640_v34 = vadd.f32 1.0, %v608_v14  ;;  %vm577_vm15 = vcmp.gt.f32.partialorder %v2160_v52, 0.5  ;;  %v682_v3 = vld [vmem:[%s2213_s8 + $0x40] sm:$0xff] }
  0x92   : > { %v641_v35 = vadd.f32 1.0, %v609_v15  ;;  %v643_v44 = vmul.f32 0.5, %v2067_v6  ;;  %v644_v45 = vmul.f32 0.5, %v2072_v10  ;;  %v645_v46 = vmul.f32 0.5, %v2074_v11  ;;  %v674_v11 = vld [vmem:[%s2213_s8] sm:$0xff]  ;;  %v681_v2 = vld [vmem:[%s2213_s8 + $0x38] sm:$0xff] }
  0x93   : > { %v646_v53 = vmul.f32 0.5, %v2076_v12  ;;  %v647_v54 = vmul.f32 0.5, %v2084_v17  ;;  %v648_v55 = vmul.f32 0.5, %v2086_v18  ;;  %v649_v5 = vmul.f32 0.5, %v2088_v19  ;;  %s2291_s11 = scalar_lea.vmem [#allocation11], %s1538_s15  ;;  %v2365_v20 = vld [vmem:[%s2053_s13] sm:$0xff] }
  0x94   : > { %v650_v59 = vmul.f32 0.5, %v2105_v27  ;;  %v2200_v60 = vmul.f32 0.5, %v2107_v28  ;;  %v2203_v61 = vmul.f32 0.5, %v2109_v29  ;;  %v2206_v6 = vmul.f32 0.5, %v2126_v37  ;;  %v675_v27 = vld [vmem:[%s2213_s8 + $0x8] sm:$0xff]  ;;  %v676_v28 = vld [vmem:[%s2213_s8 + $0x10] sm:$0xff] }
  0x95   : > { %v2209_v10 = vmul.f32 0.5, %v2128_v38  ;;  %v2217_v12 = vmul.f32 0.5, %v2130_v39  ;;  %v2220_v17 = vmul.f32 0.5, %v2147_v47  ;;  %v2223_v18 = vmul.f32 0.5, %v2149_v48  ;;  %v677_v29 = vld [vmem:[%s2213_s8 + $0x18] sm:$0xff]  ;;  %v678_v37 = vld [vmem:[%s2213_s8 + $0x20] sm:$0xff] }
  0x96   : > { %v2226_v19 = vmul.f32 0.5, %v2151_v49  ;;  %v2232_v38 = vmul.f32 0.5, %v627_v56  ;;  %v2234_v39 = vmul.f32 0.5, %v628_v57  ;;  %v2236_v47 = vmul.f32 0.5, %v629_v58  ;;  %v679_v48 = vld [vmem:[%s2213_s8 + $0x28] sm:$0xff]  ;;  %v680_v49 = vld [vmem:[%s2213_s8 + $0x30] sm:$0xff] }
  0x97   : > { %v2238_v1 = vmul.f32 0.5, %v630_v62  ;;  %v2244_v9 = vmul.f32 0.5, %v631_v63  ;;  %v2246_v14 = vmul.f32 0.5, %v632_v0  ;;  %v2248_v15 = vmul.f32 0.5, %v633_v4  ;;  %v683_v57 = vld [vmem:[%s2213_s8 + $0x48] sm:$0xff]  ;;  %v684_v58 = vld [vmem:[%s2213_s8 + $0x50] sm:$0xff] }
  0x98   : > { %3067 = vst [vmem:[#allocation33_spill] sm:$0xff] %v2234_v39  ;;  %3068 = vst [vmem:[#allocation34_spill] sm:$0xff] %v2236_v47  ;;  %v2250_v56 = vmul.f32 0.5, %v634_v7  ;;  %v685_v62 = vld [vmem:[%s2213_s8 + $0x58] sm:$0xff]  ;;  %v2256_v47 = vmul.f32 0.5, %v635_v8  ;;  %v2258_v63 = vmul.f32 0.5, %v636_v16 }
  0x99   : > { %3069 = vst [vmem:[#allocation35_spill] sm:$0xff] %v2238_v1  ;;  %3070 = vst [vmem:[#allocation36_spill] sm:$0xff] %v2244_v9  ;;  %v686_v1 = vld [vmem:[%s2213_s8 + $0x60] sm:$0xff]  ;;  %v2260_v0 = vmul.f32 0.5, %v637_v24  ;;  %v2262_v4 = vmul.f32 0.5, %v638_v25  ;;  %v688_v7 = vld [vmem:[%s2213_s8 + $0x70] sm:$0xff]  ;;  %v738_v24 = vsel %vm562_vm0, %v642_v36, %v674_v11  ;;  %v745_v11 = vsel %vm569_vm7, %v649_v5, %v681_v2 }
  0x9a   : > { %3071 = vst [vmem:[#allocation37_spill] sm:$0xff] %v2246_v14  ;;  %3072 = vst [vmem:[#allocation38_spill] sm:$0xff] %v2248_v15  ;;  %v687_v15 = vld [vmem:[%s2213_s8 + $0x68] sm:$0xff]  ;;  %v2267_v14 = vmul.f32 0.5, %v639_v26  ;;  %v2269_v9 = vmul.f32 0.5, %v640_v34  ;;  %v2271_v39 = vmul.f32 0.5, %v641_v35  ;;  %v739_v26 = vsel %vm563_vm1, %v643_v44, %v675_v27 }
  0x9b   : > { %3073 = vst [vmem:[#allocation39_spill] sm:$0xff] %v2250_v56  ;;  %3074 = vst [vmem:[#allocation40_spill] sm:$0xff] %v2258_v63  ;;  %v689_v56 = vld [vmem:[%s2213_s8 + $0x78] sm:$0xff]  ;;  %v690_v8 = vld [vmem:[%s2213_s8 + $0x80] sm:$0xff]  ;;  %v740_v34 = vsel %vm564_vm2, %v644_v45, %v676_v28  ;;  %v741_v35 = vsel %vm565_vm3, %v645_v46, %v677_v29  ;;  %v743_v46 = vsel %vm567_vm5, %v647_v54, %v679_v48  ;;  %v851_v51 = vmax.f32 %v2365_v20, 0.0  ;;  %s539_s28 = scalar_lea.vmem [#allocation12], %s1483_s12 }
  0x9c   : > { %3075 = vst [vmem:[#allocation41_spill] sm:$0xff] %v2260_v0  ;;  %3076 = vst [vmem:[#allocation42_spill] sm:$0xff] %v2262_v4  ;;  %v691_v16 = vld [vmem:[%s2213_s8 + $0x88] sm:$0xff]  ;;  %v692_v63 = vld [vmem:[%s2213_s8 + $0x90] sm:$0xff]  ;;  %v746_v27 = vsel %vm570_vm8, %v650_v59, %v682_v3  ;;  %v748_v5 = vsel %vm572_vm10, %v2203_v61, %v684_v58  ;;  %v749_v59 = vsel %vm573_vm11, %v2206_v6, %v685_v62  ;;  %s1198_s0 = scalar_lea.sflag [#allocation4], %s2030_s17  ;;  %s1203_s1 = scalar_lea.sflag [#allocation13], %s2030_s17 }
  0x9d   : > { %3077 = vst [vmem:[#allocation43_spill] sm:$0xff] %v2271_v39  ;;  %v693_v25 = vld [vmem:[%s2213_s8 + $0x98] sm:$0xff]  ;;  %v694_v4 = vld [vmem:[%s2213_s8 + $0xa0] sm:$0xff]  ;;  %v695_v0 = vld [vmem:[%s2213_s8 + $0xa8] sm:$0xff]  ;;  %v742_v39 = vsel %vm566_vm4, %v646_v53, %v678_v37  ;;  %v744_v53 = vsel %vm568_vm6, %v648_v55, %v680_v49  ;;  %v747_v55 = vsel %vm571_vm9, %v2200_v60, %v683_v57  ;;  %v750_v37 = vsel %vm574_vm12, %v2209_v10, %v686_v1 }
  0x9e   : > { %1484 = vst [vmem:[%s2291_s11 + $0x180] sm:$0xff] %v738_v24  ;;  %v696_v36 = vld [vmem:[%s2213_s8 + $0xb0] sm:$0xff]  ;;  %v697_v44 = vld [vmem:[%s2213_s8 + $0xb8] sm:$0xff]  ;;  %v698_v45 = vld [vmem:[%s2213_s8 + $0xc0] sm:$0xff]  ;;  %v751_v6 = vsel %vm575_vm13, %v2217_v12, %v687_v15  ;;  %v752_v10 = vsel %vm576_vm14, %v2220_v17, %v688_v7  ;;  %v753_v1 = vsel %vm577_vm15, %v2223_v18, %v689_v56  ;;  %v754_v48 = vsel %vm562_vm0, %v2226_v19, %v690_v8 }
  0x9f   : > { %1485 = vst [vmem:[%s2291_s11 + $0x188] sm:$0xff] %v739_v26  ;;  %1486 = vst [vmem:[%s2291_s11 + $0x190] sm:$0xff] %v740_v34  ;;  %v699_v54 = vld [vmem:[%s2213_s8 + $0xc8] sm:$0xff]  ;;  %v700_v28 = vld [vmem:[%s2213_s8 + $0xd0] sm:$0xff]  ;;  %v755_v17 = vsel %vm563_vm1, %v2232_v38, %v691_v16 }
  0xa0   : > { %1487 = vst [vmem:[%s2291_s11 + $0x198] sm:$0xff] %v741_v35  ;;  %1488 = vst [vmem:[%s2291_s11 + $0x1a0] sm:$0xff] %v742_v39  ;;  %v701_v29 = vld [vmem:[%s2213_s8 + $0xd8] sm:$0xff]  ;;  %v702_v60 = vld [vmem:[%s2213_s8 + $0xe0] sm:$0xff]  ;;  %v763_v33 = vsel %vm571_vm9, %v2256_v47, %v699_v54 }
  0xa1   : > { %1489 = vst [vmem:[%s2291_s11 + $0x1a8] sm:$0xff] %v743_v46  ;;  %1490 = vst [vmem:[%s2291_s11 + $0x1b0] sm:$0xff] %v744_v53  ;;  %v703_v39 = vld [vmem:[%s2213_s8 + $0xe8] sm:$0xff]  ;;  %v704_v61 = vld [vmem:[%s2213_s8 + $0xf0] sm:$0xff] }
  0xa2   : > { %1491 = vst [vmem:[%s2291_s11 + $0x1b8] sm:$0xff] %v745_v11  ;;  %1492 = vst [vmem:[%s2291_s11 + $0x1c0] sm:$0xff] %v746_v27  ;;  %v705_v12 = vld [vmem:[%s2213_s8 + $0xf8] sm:$0xff]  ;;  %v3078_v49 = vld [vmem:[#allocation33_spill] sm:$0xff]  ;;  %v767_v43 = vsel %vm575_vm13, %v2267_v14, %v703_v39  ;;  %v768_v47 = vsel %vm576_vm14, %v2269_v9, %v704_v61 }
  0xa3   : > { %1493 = vst [vmem:[%s2291_s11 + $0x1c8] sm:$0xff] %v747_v55  ;;  %1494 = vst [vmem:[%s2291_s11 + $0x1d0] sm:$0xff] %v748_v5  ;;  %v756_v18 = vsel %vm564_vm2, %v3078_v49, %v692_v63  ;;  %v3079_v2 = vld [vmem:[#allocation34_spill] sm:$0xff]  ;;  %v3080_v19 = vld [vmem:[#allocation35_spill] sm:$0xff] }
  0xa4   : > { %1495 = vst [vmem:[%s2291_s11 + $0x1d8] sm:$0xff] %v749_v59  ;;  %1496 = vst [vmem:[%s2291_s11 + $0x1e0] sm:$0xff] %v750_v37  ;;  %v757_v13 = vsel %vm565_vm3, %v3079_v2, %v693_v25  ;;  %v758_v3 = vsel %vm566_vm4, %v3080_v19, %v694_v4  ;;  %v2368_v21 = vld [vmem:[%s2053_s13 + $0x8] sm:$0xff]  ;;  %v3082_v15 = vld [vmem:[#allocation37_spill] sm:$0xff]  ;;  %v2606_v37 = vmin.f32 %v851_v51, 1.0 }
  0xa5   : > { %1497 = vst [vmem:[%s2291_s11 + $0x1e8] sm:$0xff] %v751_v6  ;;  %1498 = vst [vmem:[%s2291_s11 + $0x1f0] sm:$0xff] %v752_v10  ;;  %v3081_v38 = vld [vmem:[#allocation36_spill] sm:$0xff]  ;;  %v760_v23 = vsel %vm568_vm6, %v3082_v15, %v696_v36  ;;  %v3083_v56 = vld [vmem:[#allocation38_spill] sm:$0xff]  ;;  %v852_v35 = vmax.f32 %v2368_v21, 0.0 }
  0xa6   : > { %1499 = vst [vmem:[%s2291_s11 + $0x1f8] sm:$0xff] %v753_v1  ;;  %1500 = vst [vmem:[%s2291_s11 + $0x200] sm:$0xff] %v754_v48  ;;  %v759_v22 = vsel %vm567_vm5, %v3081_v38, %v695_v0  ;;  %v761_v57 = vsel %vm569_vm7, %v3083_v56, %v697_v44  ;;  %v3084_v58 = vld [vmem:[#allocation39_spill] sm:$0xff]  ;;  %v2387_v30 = vld [vmem:[%s2053_s13 + $0x10] sm:$0xff] }
  0xa7   : > { %v762_v62 = vsel %vm570_vm8, %v3084_v58, %v698_v45  ;;  %1501 = vst [vmem:[%s2291_s11 + $0x208] sm:$0xff] %v755_v17  ;;  %1502 = vst [vmem:[%s2291_s11 + $0x210] sm:$0xff] %v756_v18  ;;  %v2390_v31 = vld [vmem:[%s2053_s13 + $0x18] sm:$0xff]  ;;  %v2393_v32 = vld [vmem:[%s2053_s13 + $0x20] sm:$0xff]  ;;  %v853_v36 = vmax.f32 %v2387_v30, 0.0  ;;  %v2610_v5 = vmin.f32 %v852_v35, 1.0 }
  0xa8   : > { %1503 = vst [vmem:[%s2291_s11 + $0x218] sm:$0xff] %v757_v13  ;;  %1504 = vst [vmem:[%s2291_s11 + $0x220] sm:$0xff] %v758_v3  ;;  %v3085_v63 = vld [vmem:[#allocation40_spill] sm:$0xff]  ;;  %v3086_v4 = vld [vmem:[#allocation41_spill] sm:$0xff]  ;;  %v854_v44 = vmax.f32 %v2390_v31, 0.0  ;;  %v855_v11 = vmax.f32 %v2393_v32, 0.0 }
  0xa9   : > { %v764_v0 = vsel %vm572_vm10, %v3085_v63, %v700_v28  ;;  %v765_v7 = vsel %vm573_vm11, %v3086_v4, %v701_v29  ;;  %v3087_v8 = vld [vmem:[#allocation42_spill] sm:$0xff]  ;;  %1505 = vst [vmem:[%s2291_s11 + $0x228] sm:$0xff] %v759_v22  ;;  %1506 = vst [vmem:[%s2291_s11 + $0x230] sm:$0xff] %v760_v23  ;;  %v2412_v40 = vld [vmem:[%s2053_s13 + $0x28] sm:$0xff]  ;;  %v2614_v15 = vmin.f32 %v853_v36, 1.0 }
  0xaa   : > { %v766_v16 = vsel %vm574_vm12, %v3087_v8, %v702_v60  ;;  %1507 = vst [vmem:[%s2291_s11 + $0x238] sm:$0xff] %v761_v57  ;;  %1508 = vst [vmem:[%s2291_s11 + $0x240] sm:$0xff] %v762_v62  ;;  %v2415_v41 = vld [vmem:[%s2053_s13 + $0x30] sm:$0xff]  ;;  %v2418_v42 = vld [vmem:[%s2053_s13 + $0x38] sm:$0xff]  ;;  %v856_v27 = vmax.f32 %v2412_v40, 0.0  ;;  %v2618_v54 = vmin.f32 %v854_v44, 1.0 }
  0xab   : > { %v3088_v24 = vld [vmem:[#allocation43_spill] sm:$0xff]  ;;  %1509 = vst [vmem:[%s2291_s11 + $0x248] sm:$0xff] %v763_v33  ;;  %1510 = vst [vmem:[%s2291_s11 + $0x250] sm:$0xff] %v764_v0  ;;  %v2437_v50 = vld [vmem:[%s2053_s13 + $0x48] sm:$0xff]  ;;  %v2622_v20 = vmin.f32 %v855_v11, 1.0  ;;  %v3089_v21 = vmax.f32 %v2415_v41, 0.0 }
  0xac   : > { %v769_v25 = vsel %vm577_vm15, %v3088_v24, %v705_v12  ;;  %1511 = vst [vmem:[%s2291_s11 + $0x258] sm:$0xff] %v765_v7  ;;  %1512 = vst [vmem:[%s2291_s11 + $0x260] sm:$0xff] %v766_v16  ;;  %v2434_v26 = vld [vmem:[%s2053_s13 + $0x40] sm:$0xff]  ;;  %v2440_v14 = vld [vmem:[%s2053_s13 + $0x50] sm:$0xff]  ;;  %v2626_v51 = vmin.f32 %v856_v27, 1.0  ;;  %v3090_v30 = vmax.f32 %v2418_v42, 0.0 }
  0xad   : > { %1513 = vst [vmem:[%s2291_s11 + $0x268] sm:$0xff] %v767_v43  ;;  %1514 = vst [vmem:[%s2291_s11 + $0x270] sm:$0xff] %v768_v47  ;;  %v2447_v52 = vld [vmem:[%s2053_s13 + $0x58] sm:$0xff]  ;;  %v2450_v9 = vld [vmem:[%s2053_s13 + $0x60] sm:$0xff]  ;;  %v2630_v35 = vmin.f32 %v3089_v21, 1.0  ;;  %v3091_v31 = vmax.f32 %v2434_v26, 0.0 }
  0xae   : > { %1515 = vst [vmem:[%s2291_s11 + $0x278] sm:$0xff] %v769_v25  ;;  %v2453_v34 = vld [vmem:[%s2053_s13 + $0x68] sm:$0xff]  ;;  %v2459_v45 = vld [vmem:[%s2053_s13 + $0x70] sm:$0xff]  ;;  %v2462_v46 = vld [vmem:[%s2053_s13 + $0x78] sm:$0xff]  ;;  %v2634_v36 = vmin.f32 %v3090_v30, 1.0  ;;  %v3092_v32 = vmax.f32 %v2437_v50, 0.0 }
  0xaf   : > { %v2465_v53 = vld [vmem:[%s2053_s13 + $0x80] sm:$0xff]  ;;  %v2471_v28 = vld [vmem:[%s2053_s13 + $0x88] sm:$0xff]  ;;  %v2474_v29 = vld [vmem:[%s2053_s13 + $0x90] sm:$0xff]  ;;  %v2638_v44 = vmin.f32 %v3091_v31, 1.0  ;;  %947 = vst [vmem:[%s2291_s11] sm:$0xff] %v2606_v37  ;;  %v3093_v41 = vmax.f32 %v2440_v14, 0.0  ;;  %v3094_v42 = vmax.f32 %v2447_v52, 0.0 }
  0xb0   : > { %v2477_v55 = vld [vmem:[%s2053_s13 + $0x98] sm:$0xff]  ;;  %v2483_v60 = vld [vmem:[%s2053_s13 + $0xa0] sm:$0xff]  ;;  %v2486_v39 = vld [vmem:[%s2053_s13 + $0xa8] sm:$0xff]  ;;  %v2644_v40 = vmin.f32 %v3092_v32, 1.0  ;;  %v3095_v26 = vmax.f32 %v2450_v9, 0.0  ;;  %948 = vst [vmem:[%s2291_s11 + $0x8] sm:$0xff] %v2610_v5 }
  0xb1   : > { %v2489_v61 = vld [vmem:[%s2053_s13 + $0xb0] sm:$0xff]  ;;  %v2495_v48 = vld [vmem:[%s2053_s13 + $0xb8] sm:$0xff]  ;;  %v2498_v12 = vld [vmem:[%s2053_s13 + $0xc0] sm:$0xff]  ;;  %v2648_v11 = vmin.f32 %v3093_v41, 1.0  ;;  %v2652_v27 = vmin.f32 %v3094_v42, 1.0  ;;  %949 = vst [vmem:[%s2291_s11 + $0x10] sm:$0xff] %v2614_v15 }
  0xb2   : > { %v2501_v17 = vld [vmem:[%s2053_s13 + $0xc8] sm:$0xff]  ;;  %v2507_v13 = vld [vmem:[%s2053_s13 + $0xd0] sm:$0xff]  ;;  %v2510_v19 = vld [vmem:[%s2053_s13 + $0xd8] sm:$0xff]  ;;  %v2656_v21 = vmin.f32 %v3095_v26, 1.0  ;;  %950 = vst [vmem:[%s2291_s11 + $0x18] sm:$0xff] %v2618_v54  ;;  %v3096_v50 = vmax.f32 %v2453_v34, 0.0 }
  0xb3   : > { %v2513_v3 = vld [vmem:[%s2053_s13 + $0xe0] sm:$0xff]  ;;  %v2519_v23 = vld [vmem:[%s2053_s13 + $0xe8] sm:$0xff]  ;;  %v2522_v56 = vld [vmem:[%s2053_s13 + $0xf0] sm:$0xff]  ;;  %951 = vst [vmem:[%s2291_s11 + $0x20] sm:$0xff] %v2622_v20  ;;  %v3097_v52 = vmax.f32 %v2459_v45, 0.0  ;;  %v3098_v30 = vmax.f32 %v2462_v46, 0.0 }
  0xb4   : > { %v2525_v57 = vld [vmem:[%s2053_s13 + $0xf8] sm:$0xff]  ;;  %v2531_v63 = vld [vmem:[%s2053_s13 + $0x100] sm:$0xff]  ;;  %v2534_v0 = vld [vmem:[%s2053_s13 + $0x108] sm:$0xff]  ;;  %v2668_v14 = vmin.f32 %v3096_v50, 1.0  ;;  %v3099_v32 = vmax.f32 %v2465_v53, 0.0  ;;  %952 = vst [vmem:[%s2291_s11 + $0x28] sm:$0xff] %v2626_v51 }
  0xb5   : > { %v2537_v4 = vld [vmem:[%s2053_s13 + $0x110] sm:$0xff]  ;;  %v2543_v43 = vld [vmem:[%s2053_s13 + $0x118] sm:$0xff]  ;;  %v2546_v47 = vld [vmem:[%s2053_s13 + $0x120] sm:$0xff]  ;;  %v2672_v9 = vmin.f32 %v3097_v52, 1.0  ;;  %v2676_v31 = vmin.f32 %v3098_v30, 1.0  ;;  %953 = vst [vmem:[%s2291_s11 + $0x30] sm:$0xff] %v2630_v35 }
  0xb6   : > { %v2549_v24 = vld [vmem:[%s2053_s13 + $0x128] sm:$0xff]  ;;  %v2555_v62 = vld [vmem:[%s2053_s13 + $0x130] sm:$0xff]  ;;  %v2558_v8 = vld [vmem:[%s2053_s13 + $0x138] sm:$0xff]  ;;  %v2680_v41 = vmin.f32 %v3099_v32, 1.0  ;;  %954 = vst [vmem:[%s2291_s11 + $0x38] sm:$0xff] %v2634_v36  ;;  %v3100_v34 = vmax.f32 %v2471_v28, 0.0 }
  0xb7   : > { %v2561_v16 = vld [vmem:[%s2053_s13 + $0x140] sm:$0xff]  ;;  %v2567_v25 = vld [vmem:[%s2053_s13 + $0x148] sm:$0xff]  ;;  %v2570_v38 = vld [vmem:[%s2053_s13 + $0x150] sm:$0xff]  ;;  %v888_v7 = vmax.f32 %v2549_v24, 0.0  ;;  %v890_v18 = vmax.f32 %v2558_v8, 0.0  ;;  %955 = vst [vmem:[%s2291_s11 + $0x40] sm:$0xff] %v2638_v44 }
  0xb8   : > { %v2573_v33 = vld [vmem:[%s2053_s13 + $0x158] sm:$0xff]  ;;  %v2579_v49 = vld [vmem:[%s2053_s13 + $0x160] sm:$0xff]  ;;  %v2582_v1 = vld [vmem:[%s2053_s13 + $0x168] sm:$0xff]  ;;  %v892_v59 = vmax.f32 %v2567_v25, 0.0  ;;  %v2692_v45 = vmin.f32 %v3100_v34, 1.0  ;;  %v3101_v46 = vmax.f32 %v2474_v29, 0.0 }
  0xb9   : > { %v2585_v58 = vld [vmem:[%s2053_s13 + $0x170] sm:$0xff]  ;;  %v2591_v6 = vld [vmem:[%s2053_s13 + $0x178] sm:$0xff]  ;;  %v894_v22 = vmax.f32 %v2573_v33, 0.0  ;;  %v896_v10 = vmax.f32 %v2582_v1, 0.0  ;;  %v3102_v42 = vmax.f32 %v2477_v55, 0.0  ;;  %v3103_v50 = vmax.f32 %v2483_v60, 0.0 }
  0xba   : > { %v898_v2 = vmax.f32 %v2591_v6, 0.0  ;;  %v2696_v53 = vmin.f32 %v3101_v46, 1.0  ;;  %956 = vst [vmem:[%s2291_s11 + $0x48] sm:$0xff] %v2644_v40  ;;  %957 = vst [vmem:[%s2291_s11 + $0x50] sm:$0xff] %v2648_v11  ;;  %v3104_v28 = vmax.f32 %v2486_v39, 0.0  ;;  %v3105_v55 = vmax.f32 %v2489_v61, 0.0 }
  0xbb   : > { %v2700_v26 = vmin.f32 %v3102_v42, 1.0  ;;  %v2704_v52 = vmin.f32 %v3103_v50, 1.0  ;;  %958 = vst [vmem:[%s2291_s11 + $0x58] sm:$0xff] %v2652_v27  ;;  %959 = vst [vmem:[%s2291_s11 + $0x60] sm:$0xff] %v2656_v21  ;;  %v3106_v30 = vmax.f32 %v2495_v48, 0.0  ;;  %v3107_v34 = vmax.f32 %v2498_v12, 0.0 }
  0xbc   : > { %v2716_v29 = vmin.f32 %v3104_v28, 1.0  ;;  %v2720_v60 = vmin.f32 %v3105_v55, 1.0  ;;  %960 = vst [vmem:[%s2291_s11 + $0x68] sm:$0xff] %v2668_v14  ;;  %961 = vst [vmem:[%s2291_s11 + $0x70] sm:$0xff] %v2672_v9  ;;  %v3108_v39 = vmax.f32 %v2501_v17, 0.0  ;;  %v3109_v48 = vmax.f32 %v2507_v13, 0.0 }
  0xbd   : > { %v2724_v32 = vmin.f32 %v3106_v30, 1.0  ;;  %v2728_v46 = vmin.f32 %v3107_v34, 1.0  ;;  %962 = vst [vmem:[%s2291_s11 + $0x78] sm:$0xff] %v2676_v31  ;;  %963 = vst [vmem:[%s2291_s11 + $0x80] sm:$0xff] %v2680_v41  ;;  %v3110_v42 = vmax.f32 %v2510_v19, 0.0  ;;  %v3111_v28 = vmax.f32 %v2513_v3, 0.0 }
  0xbe   : > { %v2740_v61 = vmin.f32 %v3108_v39, 1.0  ;;  %v2744_v12 = vmin.f32 %v3109_v48, 1.0  ;;  %964 = vst [vmem:[%s2291_s11 + $0x88] sm:$0xff] %v2692_v45  ;;  %965 = vst [vmem:[%s2291_s11 + $0x90] sm:$0xff] %v2696_v53  ;;  %v3112_v17 = vmax.f32 %v2519_v23, 0.0  ;;  %v3113_v19 = vmax.f32 %v2522_v56, 0.0 }
  0xbf   : > { %v2748_v50 = vmin.f32 %v3110_v42, 1.0  ;;  %v2752_v55 = vmin.f32 %v3111_v28, 1.0  ;;  %966 = vst [vmem:[%s2291_s11 + $0x98] sm:$0xff] %v2700_v26  ;;  %967 = vst [vmem:[%s2291_s11 + $0xa0] sm:$0xff] %v2704_v52  ;;  %v3114_v30 = vmax.f32 %v2525_v57, 0.0  ;;  %v3115_v39 = vmax.f32 %v2531_v63, 0.0 }
  0xc0   : > { %v2764_v13 = vmin.f32 %v3112_v17, 1.0  ;;  %v2768_v3 = vmin.f32 %v3113_v19, 1.0  ;;  %968 = vst [vmem:[%s2291_s11 + $0xa8] sm:$0xff] %v2716_v29  ;;  %969 = vst [vmem:[%s2291_s11 + $0xb0] sm:$0xff] %v2720_v60  ;;  %v3116_v23 = vmax.f32 %v2534_v0, 0.0  ;;  %v3117_v57 = vmax.f32 %v2537_v4, 0.0 }
  0xc1   : > { %v2772_v34 = vmin.f32 %v3114_v30, 1.0  ;;  %v2776_v48 = vmin.f32 %v3115_v39, 1.0  ;;  %970 = vst [vmem:[%s2291_s11 + $0xb8] sm:$0xff] %v2724_v32  ;;  %971 = vst [vmem:[%s2291_s11 + $0xc0] sm:$0xff] %v2728_v46  ;;  %v3118_v42 = vmax.f32 %v2543_v43, 0.0  ;;  %v3119_v17 = vmax.f32 %v2546_v47, 0.0 }
  0xc2   : > { %v2788_v56 = vmin.f32 %v3116_v23, 1.0  ;;  %v2792_v63 = vmin.f32 %v3117_v57, 1.0  ;;  %972 = vst [vmem:[%s2291_s11 + $0xc8] sm:$0xff] %v2740_v61  ;;  %973 = vst [vmem:[%s2291_s11 + $0xd0] sm:$0xff] %v2744_v12  ;;  %v2812_v0 = vmin.f32 %v888_v7, 1.0  ;;  %v3120_v4 = vmax.f32 %v2555_v62, 0.0 }
  0xc3   : > { %v2796_v28 = vmin.f32 %v3118_v42, 1.0  ;;  %v2800_v19 = vmin.f32 %v3119_v17, 1.0  ;;  %974 = vst [vmem:[%s2291_s11 + $0xd8] sm:$0xff] %v2748_v50  ;;  %975 = vst [vmem:[%s2291_s11 + $0xe0] sm:$0xff] %v2752_v55  ;;  %v2820_v47 = vmin.f32 %v890_v18, 1.0  ;;  %v3121_v30 = vmax.f32 %v2561_v16, 0.0 }
  0xc4   : > { %v2816_v43 = vmin.f32 %v3120_v4, 1.0  ;;  %976 = vst [vmem:[%s2291_s11 + $0xe8] sm:$0xff] %v2764_v13  ;;  %977 = vst [vmem:[%s2291_s11 + $0xf0] sm:$0xff] %v2768_v3  ;;  %v2836_v18 = vmin.f32 %v892_v59, 1.0  ;;  %v3122_v62 = vmax.f32 %v2570_v38, 0.0  ;;  %v2844_v8 = vmin.f32 %v894_v22, 1.0 }
  0xc5   : > { %v2824_v39 = vmin.f32 %v3121_v30, 1.0  ;;  %978 = vst [vmem:[%s2291_s11 + $0xf8] sm:$0xff] %v2772_v34  ;;  %979 = vst [vmem:[%s2291_s11 + $0x100] sm:$0xff] %v2776_v48  ;;  %v3123_v16 = vmax.f32 %v2579_v49, 0.0  ;;  %v2860_v59 = vmin.f32 %v896_v10, 1.0  ;;  %v3124_v49 = vmax.f32 %v2585_v58, 0.0 }
  0xc6   : > { %v2840_v7 = vmin.f32 %v3122_v62, 1.0  ;;  %980 = vst [vmem:[%s2291_s11 + $0x108] sm:$0xff] %v2788_v56  ;;  %981 = vst [vmem:[%s2291_s11 + $0x110] sm:$0xff] %v2792_v63  ;;  %v2868_v22 = vmin.f32 %v898_v2, 1.0  ;;  %v995_v6 = vld [vmem:[%s2051_s16] sm:$0xff]  ;;  %v996_v10 = vld [vmem:[%s2051_s16 + $0x8] sm:$0xff] }
  0xc7   : > { %v2848_v24 = vmin.f32 %v3123_v16, 1.0  ;;  %982 = vst [vmem:[%s2291_s11 + $0x118] sm:$0xff] %v2796_v28  ;;  %983 = vst [vmem:[%s2291_s11 + $0x120] sm:$0xff] %v2800_v19  ;;  %v2864_v38 = vmin.f32 %v3124_v49, 1.0  ;;  %v997_v1 = vld [vmem:[%s2051_s16 + $0x10] sm:$0xff]  ;;  %v1043_v2 = vsub.f32 %v2606_v37, %v995_v6  ;;  %v1044_v58 = vsub.f32 %v2610_v5, %v996_v10  ;;  %v998_v33 = vld [vmem:[%s2051_s16 + $0x18] sm:$0xff] }
  0xc8   : > { %984 = vst [vmem:[%s2291_s11 + $0x128] sm:$0xff] %v2812_v0  ;;  %985 = vst [vmem:[%s2291_s11 + $0x130] sm:$0xff] %v2816_v43  ;;  %v1045_v25 = vsub.f32 %v2614_v15, %v997_v1  ;;  %v999_v23 = vld [vmem:[%s2051_s16 + $0x20] sm:$0xff]  ;;  %v1046_v57 = vsub.f32 %v2618_v54, %v998_v33  ;;  %v1000_v4 = vld [vmem:[%s2051_s16 + $0x28] sm:$0xff] }
  0xc9   : > { %986 = vst [vmem:[%s2291_s11 + $0x138] sm:$0xff] %v2820_v47  ;;  %987 = vst [vmem:[%s2291_s11 + $0x140] sm:$0xff] %v2824_v39  ;;  %v1091_v42 = vmul.f32 %v1043_v2, %v1043_v2  ;;  %v1092_v17 = vmul.f32 %v1044_v58, %v1044_v58  ;;  %v1047_v30 = vsub.f32 %v2622_v20, %v999_v23  ;;  %v1001_v16 = vld [vmem:[%s2051_s16 + $0x30] sm:$0xff]  ;;  %v1002_v6 = vld [vmem:[%s2051_s16 + $0x38] sm:$0xff] }
  0xca   : > { %988 = vst [vmem:[%s2291_s11 + $0x148] sm:$0xff] %v2836_v18  ;;  %989 = vst [vmem:[%s2291_s11 + $0x150] sm:$0xff] %v2840_v7  ;;  %v1093_v62 = vmul.f32 %v1045_v25, %v1045_v25  ;;  %v1048_v37 = vsub.f32 %v2626_v51, %v1000_v4  ;;  %v1094_v49 = vmul.f32 %v1046_v57, %v1046_v57  ;;  %v1003_v54 = vld [vmem:[%s2051_s16 + $0x40] sm:$0xff]  ;;  %v1004_v20 = vld [vmem:[%s2051_s16 + $0x48] sm:$0xff] }
  0xcb   : > { %990 = vst [vmem:[%s2291_s11 + $0x158] sm:$0xff] %v2844_v8  ;;  %991 = vst [vmem:[%s2291_s11 + $0x160] sm:$0xff] %v2848_v24  ;;  %v1139_v5 = vadd.f32 %v1092_v17, %v1091_v42  ;;  %v1049_v15 = vsub.f32 %v2630_v35, %v1001_v16  ;;  %v1095_v10 = vmul.f32 %v1047_v30, %v1047_v30  ;;  %v1005_v57 = vld [vmem:[%s2051_s16 + $0x50] sm:$0xff]  ;;  %v1006_v4 = vld [vmem:[%s2051_s16 + $0x58] sm:$0xff] }
  0xcc   : > { %992 = vst [vmem:[%s2291_s11 + $0x168] sm:$0xff] %v2860_v59  ;;  %993 = vst [vmem:[%s2291_s11 + $0x170] sm:$0xff] %v2864_v38  ;;  %v1050_v2 = vsub.f32 %v2634_v36, %v1002_v6  ;;  %v1096_v58 = vmul.f32 %v1048_v37, %v1048_v37  ;;  %v1051_v25 = vsub.f32 %v2638_v44, %v1003_v54  ;;  %v1007_v16 = vld [vmem:[%s2051_s16 + $0x60] sm:$0xff] }
  0xcd   : > { %994 = vst [vmem:[%s2291_s11 + $0x178] sm:$0xff] %v2868_v22  ;;  %v1140_v1 = vadd.f32 %v1139_v5, %v1093_v62  ;;  %v1097_v23 = vmul.f32 %v1049_v15, %v1049_v15  ;;  %v1052_v42 = vsub.f32 %v2644_v40, %v1004_v20  ;;  %v1053_v30 = vsub.f32 %v2648_v11, %v1005_v57  ;;  %v1008_v5 = vld [vmem:[%s2051_s16 + $0x68] sm:$0xff]  ;;  %v1011_v20 = vld [vmem:[%s2051_s16 + $0x80] sm:$0xff] }
  0xce   : > { %v1098_v17 = vmul.f32 %v1050_v2, %v1050_v2  ;;  %v1099_v62 = vmul.f32 %v1051_v25, %v1051_v25  ;;  %v1054_v37 = vsub.f32 %v2652_v27, %v1006_v4  ;;  %v1055_v6 = vsub.f32 %v2656_v21, %v1007_v16  ;;  %v1010_v2 = vld [vmem:[%s2051_s16 + $0x78] sm:$0xff]  ;;  %v1015_v16 = vld [vmem:[%s2051_s16 + $0xa0] sm:$0xff] }
  0xcf   : > { %v1141_v33 = vadd.f32 %v1140_v1, %v1094_v49  ;;  %v1100_v49 = vmul.f32 %v1052_v42, %v1052_v42  ;;  %v1101_v15 = vmul.f32 %v1053_v30, %v1053_v30  ;;  %v1056_v1 = vsub.f32 %v2668_v14, %v1008_v5  ;;  %v1014_v30 = vld [vmem:[%s2051_s16 + $0x98] sm:$0xff] }
  0xd0   : > { %v1102_v54 = vmul.f32 %v1054_v37, %v1054_v37  ;;  %v1058_v25 = vsub.f32 %v2676_v31, %v1010_v2  ;;  %v1059_v57 = vsub.f32 %v2680_v41, %v1011_v20  ;;  %v1062_v37 = vsub.f32 %v2700_v26, %v1014_v30  ;;  %v1019_v2 = vld [vmem:[%s2051_s16 + $0xc0] sm:$0xff] }
  0xd1   : > { %v1142_v51 = vadd.f32 %v1141_v33, %v1095_v10  ;;  %v1009_v10 = vld [vmem:[%s2051_s16 + $0x70] sm:$0xff]  ;;  %v1103_v33 = vmul.f32 %v1055_v6, %v1055_v6  ;;  %v1063_v5 = vsub.f32 %v2704_v52, %v1015_v16  ;;  %v1067_v20 = vsub.f32 %v2728_v46, %v1019_v2  ;;  %v1031_v2 = vld [vmem:[%s2051_s16 + $0x120] sm:$0xff] }
  0xd2   : > { %v1106_v4 = vmul.f32 %v1058_v25, %v1058_v25 }
  0xd3   : > { %v1143_v35 = vadd.f32 %v1142_v51, %v1096_v58  ;;  %v1057_v58 = vsub.f32 %v2672_v9, %v1009_v10  ;;  %v1012_v51 = vld [vmem:[%s2051_s16 + $0x88] sm:$0xff]  ;;  %v1110_v10 = vmul.f32 %v1062_v37, %v1062_v37  ;;  %v1026_v37 = vld [vmem:[%s2051_s16 + $0xf8] sm:$0xff] }
  0xd5   : > { %v1144_v36 = vadd.f32 %v1143_v35, %v1097_v23  ;;  %v1104_v23 = vmul.f32 %v1056_v1, %v1056_v1  ;;  %v1105_v42 = vmul.f32 %v1057_v58, %v1057_v58  ;;  %v1060_v35 = vsub.f32 %v2692_v45, %v1012_v51  ;;  %v1018_v1 = vld [vmem:[%s2051_s16 + $0xb8] sm:$0xff] }
  0xd6   : > { %v1066_v58 = vsub.f32 %v2724_v32, %v1018_v1 }
  0xd7   : > { %v1145_v44 = vadd.f32 %v1144_v36, %v1098_v17  ;;  %v1013_v17 = vld [vmem:[%s2051_s16 + $0x90] sm:$0xff]  ;;  %v1107_v36 = vmul.f32 %v1059_v57, %v1059_v57  ;;  %v1022_v57 = vld [vmem:[%s2051_s16 + $0xd8] sm:$0xff] }
  0xd8   : > { %v1114_v51 = vmul.f32 %v1066_v58, %v1066_v58 }
  0xd9   : > { %v1146_v40 = vadd.f32 %v1145_v44, %v1099_v62  ;;  %v1061_v62 = vsub.f32 %v2696_v53, %v1013_v17  ;;  %v1016_v44 = vld [vmem:[%s2051_s16 + $0xa8] sm:$0xff]  ;;  %v1023_v17 = vld [vmem:[%s2051_s16 + $0xe0] sm:$0xff] }
  0xda   : > { %v1071_v30 = vsub.f32 %v2752_v55, %v1023_v17 }
  0xdb   : > { %v1147_v11 = vadd.f32 %v1146_v40, %v1100_v49  ;;  %v1108_v49 = vmul.f32 %v1060_v35, %v1060_v35  ;;  %v1109_v6 = vmul.f32 %v1061_v62, %v1061_v62  ;;  %v1064_v40 = vsub.f32 %v2716_v29, %v1016_v44  ;;  %v1027_v44 = vld [vmem:[%s2051_s16 + $0x100] sm:$0xff] }
  0xdc   : > { %v1070_v35 = vsub.f32 %v2748_v50, %v1022_v57  ;;  %v1035_v57 = vld [vmem:[%s2051_s16 + $0x140] sm:$0xff] }
  0xdd   : > { %v1148_v27 = vadd.f32 %v1147_v11, %v1101_v15  ;;  %v1017_v15 = vld [vmem:[%s2051_s16 + $0xb0] sm:$0xff]  ;;  %v1111_v11 = vmul.f32 %v1063_v5, %v1063_v5  ;;  %v1074_v5 = vsub.f32 %v2772_v34, %v1026_v37  ;;  %v1083_v17 = vsub.f32 %v2824_v39, %v1035_v57  ;;  %v1040_v39 = vld [vmem:[%s2051_s16 + $0x168] sm:$0xff] }
  0xde   : > { %v1118_v16 = vmul.f32 %v1070_v35, %v1070_v35 }
  0xdf   : > { %v1149_v21 = vadd.f32 %v1148_v27, %v1102_v54  ;;  %v1065_v54 = vsub.f32 %v2720_v60, %v1017_v15  ;;  %v1020_v27 = vld [vmem:[%s2051_s16 + $0xc8] sm:$0xff]  ;;  %v1075_v15 = vsub.f32 %v2776_v48, %v1027_v44  ;;  %v1122_v1 = vmul.f32 %v1074_v5, %v1074_v5 }
  0xe1   : > { %v1150_v14 = vadd.f32 %v1149_v21, %v1103_v33  ;;  %v1112_v33 = vmul.f32 %v1064_v40, %v1064_v40  ;;  %v1113_v25 = vmul.f32 %v1065_v54, %v1065_v54  ;;  %v1068_v21 = vsub.f32 %v2740_v61, %v1020_v27  ;;  %v1030_v54 = vld [vmem:[%s2051_s16 + $0x118] sm:$0xff] }
  0xe2   : > { %v1078_v58 = vsub.f32 %v2796_v28, %v1030_v54  ;;  %v1079_v27 = vsub.f32 %v2800_v19, %v1031_v2 }
  0xe3   : > { %v1151_v9 = vadd.f32 %v1150_v14, %v1104_v23  ;;  %v1021_v23 = vld [vmem:[%s2051_s16 + $0xd0] sm:$0xff]  ;;  %v1115_v14 = vmul.f32 %v1067_v20, %v1067_v20 }
  0xe5   : > { %v1152_v31 = vadd.f32 %v1151_v9, %v1105_v42  ;;  %v1069_v42 = vsub.f32 %v2744_v12, %v1021_v23  ;;  %v1024_v9 = vld [vmem:[%s2051_s16 + $0xe8] sm:$0xff]  ;;  %v1126_v23 = vmul.f32 %v1078_v58, %v1078_v58 }
  0xe7   : > { %v1153_v41 = vadd.f32 %v1152_v31, %v1106_v4  ;;  %v1116_v4 = vmul.f32 %v1068_v21, %v1068_v21  ;;  %v1117_v62 = vmul.f32 %v1069_v42, %v1069_v42  ;;  %v1072_v31 = vsub.f32 %v2764_v13, %v1024_v9  ;;  %v1034_v21 = vld [vmem:[%s2051_s16 + $0x138] sm:$0xff] }
  0xe8   : > { %v1082_v42 = vsub.f32 %v2820_v47, %v1034_v21 }
  0xe9   : > { %v1154_v45 = vadd.f32 %v1153_v41, %v1107_v36  ;;  %v1025_v36 = vld [vmem:[%s2051_s16 + $0xf0] sm:$0xff]  ;;  %v1119_v41 = vmul.f32 %v1071_v30, %v1071_v30  ;;  %v1038_v30 = vld [vmem:[%s2051_s16 + $0x158] sm:$0xff] }
  0xea   : > { %v1130_v9 = vmul.f32 %v1082_v42, %v1082_v42 }
  0xeb   : > { %v1155_v53 = vadd.f32 %v1154_v45, %v1108_v49  ;;  %v1073_v49 = vsub.f32 %v2768_v3, %v1025_v36  ;;  %v1028_v45 = vld [vmem:[%s2051_s16 + $0x108] sm:$0xff]  ;;  %v1039_v36 = vld [vmem:[%s2051_s16 + $0x160] sm:$0xff] }
  0xec   : > { %v1087_v37 = vsub.f32 %v2848_v24, %v1039_v36 }
  0xed   : > { %v1156_v26 = vadd.f32 %v1155_v53, %v1109_v6  ;;  %v1120_v6 = vmul.f32 %v1072_v31, %v1072_v31  ;;  %v1121_v40 = vmul.f32 %v1073_v49, %v1073_v49  ;;  %v1076_v53 = vsub.f32 %v2788_v56, %v1028_v45 }
  0xee   : > { %v1086_v31 = vsub.f32 %v2844_v8, %v1038_v30 }
  0xef   : > { %v1157_v52 = vadd.f32 %v1156_v26, %v1110_v10  ;;  %v1029_v10 = vld [vmem:[%s2051_s16 + $0x110] sm:$0xff]  ;;  %v1123_v26 = vmul.f32 %v1075_v15, %v1075_v15 }
  0xf0   : > { %v1134_v44 = vmul.f32 %v1086_v31, %v1086_v31 }
  0xf1   : > { %v1158_v29 = vadd.f32 %v1157_v52, %v1111_v11  ;;  %v1077_v11 = vsub.f32 %v2792_v63, %v1029_v10  ;;  %v1032_v52 = vld [vmem:[%s2051_s16 + $0x128] sm:$0xff] }
  0xf3   : > { %v1159_v60 = vadd.f32 %v1158_v29, %v1112_v33  ;;  %v1124_v33 = vmul.f32 %v1076_v53, %v1076_v53  ;;  %v1125_v20 = vmul.f32 %v1077_v11, %v1077_v11  ;;  %v1080_v29 = vsub.f32 %v2812_v0, %v1032_v52 }
  0xf5   : > { %v1160_v32 = vadd.f32 %v1159_v60, %v1113_v25  ;;  %v1033_v25 = vld [vmem:[%s2051_s16 + $0x130] sm:$0xff]  ;;  %v1127_v60 = vmul.f32 %v1079_v27, %v1079_v27 }
  0xf7   : > { %v1161_v46 = vadd.f32 %v1160_v32, %v1114_v51  ;;  %v1081_v51 = vsub.f32 %v2816_v43, %v1033_v25  ;;  %v1036_v32 = vld [vmem:[%s2051_s16 + $0x148] sm:$0xff] }
  0xf9   : > { %v1162_v61 = vadd.f32 %v1161_v46, %v1115_v14  ;;  %v1128_v14 = vmul.f32 %v1080_v29, %v1080_v29  ;;  %v1129_v35 = vmul.f32 %v1081_v51, %v1081_v51  ;;  %v1084_v46 = vsub.f32 %v2836_v18, %v1036_v32 }
  0xfa   : > { %v1088_v18 = vsub.f32 %v2860_v59, %v1040_v39 }
  0xfb   : > { %v1163_v12 = vadd.f32 %v1162_v61, %v1116_v4  ;;  %v1037_v4 = vld [vmem:[%s2051_s16 + $0x150] sm:$0xff]  ;;  %v1131_v61 = vmul.f32 %v1083_v17, %v1083_v17 }
  0xfc   : > { %v1136_v8 = vmul.f32 %v1088_v18, %v1088_v18 }
  0xfd   : > { %v1164_v50 = vadd.f32 %v1163_v12, %v1117_v62  ;;  %v1085_v62 = vsub.f32 %v2840_v7, %v1037_v4 }
  0xff   : > { %v1165_v55 = vadd.f32 %v1164_v50, %v1118_v16  ;;  %v1132_v16 = vmul.f32 %v1084_v46, %v1084_v46  ;;  %v1133_v49 = vmul.f32 %v1085_v62, %v1085_v62  ;;  %v1041_v50 = vld [vmem:[%s2051_s16 + $0x170] sm:$0xff] }
 0x100   : > { %v1089_v7 = vsub.f32 %v2864_v38, %v1041_v50 }
 0x101   : > { %v1166_v13 = vadd.f32 %v1165_v55, %v1119_v41  ;;  %v1135_v55 = vmul.f32 %v1087_v37, %v1087_v37 }
 0x103   : > { %v1167_v3 = vadd.f32 %v1166_v13, %v1120_v6  ;;  %v1042_v6 = vld [vmem:[%s2051_s16 + $0x178] sm:$0xff]  ;;  %v1137_v13 = vmul.f32 %v1089_v7, %v1089_v7 }
 0x104   : > { %v1090_v15 = vsub.f32 %v2868_v22, %v1042_v6 }
 0x105   : > { %v1168_v34 = vadd.f32 %v1167_v3, %v1121_v40 }
 0x106   : > { %v1138_v24 = vmul.f32 %v1090_v15, %v1090_v15 }
 0x107   : > { %v1169_v48 = vadd.f32 %v1168_v34, %v1122_v1 }
 0x109   : > { %v1170_v56 = vadd.f32 %v1169_v48, %v1123_v26 }
 0x10b   : > { %v1171_v63 = vadd.f32 %v1170_v56, %v1124_v33 }
 0x10d   : > { %v1172_v28 = vadd.f32 %v1171_v63, %v1125_v20 }
 0x10f   : > { %v1173_v19 = vadd.f32 %v1172_v28, %v1126_v23 }
 0x111   : > { %v1174_v0 = vadd.f32 %v1173_v19, %v1127_v60 }
 0x113   : > { %v1175_v43 = vadd.f32 %v1174_v0, %v1128_v14 }
 0x115   : > { %v1176_v47 = vadd.f32 %v1175_v43, %v1129_v35 }
 0x117   : > { %v1177_v12 = vadd.f32 %v1176_v47, %v1130_v9 }
 0x119   : > { %v1178_v41 = vadd.f32 %v1177_v12, %v1131_v61 }
 0x11b   : > { %v1179_v5 = vadd.f32 %v1178_v41, %v1132_v16 }
 0x11d   : > { %v1180_v45 = vadd.f32 %v1179_v5, %v1133_v49 }
 0x11f   : > { %v1181_v40 = vadd.f32 %v1180_v45, %v1134_v44 }
 0x121   : > { %v1182_v10 = vadd.f32 %v1181_v40, %v1135_v55 }
 0x123   : > { %v1183_v53 = vadd.f32 %v1182_v10, %v1136_v8 }
 0x125   : > { %v1184_v1 = vadd.f32 %v1183_v53, %v1137_v13 }
 0x127   : > { %v1185_v3 = vadd.f32 %v1184_v1, %v1138_v24 }
 0x129   : > { %1186 = vadd.xlane.f32.xlu0 %v1185_v3 }
 0x1b6   : > { %v1187_v59 = vpop.xlane.xlu0 %1186 }
 0x1b7   : > { %v1188_v54 = vrot.slane %v1187_v59, 4 }
 0x1b9   : > { %v1189_v11 = vadd.f32 %v1188_v54, %v1187_v59 }
 0x1bb   : > { %v1190_v38 = vrot.slane %v1189_v11, 2 }
 0x1bd   : > { %v1191_v26 = vadd.f32 %v1190_v38, %v1189_v11 }
 0x1bf   : > { %v1192_v34 = vrot.slane %v1191_v26, 1 }
 0x1c1   : > { %v1193_v2 = vadd.f32 %v1192_v34, %v1191_v26 }
 0x1c3   : > { %1539 = vpush %v1193_v2 }
 0x1f4   : > { %s1540_s18 = spop %1539 }
 0x1f5   : > { %v1195_v22 = vstv %s1540_s18 }
 0x1f6   : > { %1196 = vst [vmem:[%s539_s28] sm:$0xff] %v1195_v22 }
 0x1f7   : > { %s1534_s2 = sshll.u32 %s1861_s25, 11  ;;  %s1233_s7 = sshll.u32 %s2291_s11, 4  ;;  %s1234_s7 = int_to_ptr.vmem [resolvable:$true] %s1233_s7 }
 0x1f8   : > { %s1216_s14 = scalar_lea.hbm %s3050_s5, %s1534_s2  ;;  %s1797_s19 = smov 2048  }
 0x1f9   : > { %p3125_p5 = scmp.ne.s32.totalorder %s3059_s9, 0  ;;  %s1798_s16 = smov 8192  }
 0x1fa   : > { %s1799_s20 = smov 8   ;;  %s1800_s13 = smov 256  }
 0x1fb   : > { %1579 = sst [smem:[#allocation23]] (%p3125_p5), %s1797_s19  ;;  %s1801_s15 = smov 16  }
 0x1fc   : > { %1580 = sst [smem:[#allocation23 + $0x1]] (%p3125_p5), %s1798_s16  ;;  %s1802_s8 = smov [#allocation22]  }
 0x1fd   : > { %1581 = sst [smem:[#allocation23 + $0x2]] (%p3125_p5), %s1799_s20  ;;  %s1803_s11 = smov 0  }
 0x1fe   : > { %1582 = sst [smem:[#allocation23 + $0x3]] (%p3125_p5), %s1800_s13  ;;  %s1520_s12 = sshll.u32 %s1861_s25, 7 }
 0x1ff   : > { %1583 = sst [smem:[#allocation23 + $0x4]] (%p3125_p5), %s1800_s13  ;;  %s1262_s18 = sshll.u32 %s539_s28, 4  ;;  %s1263_s18 = int_to_ptr.vmem [resolvable:$true] %s1262_s18 }
 0x200   : > { %1584 = sst [smem:[#allocation23 + $0x5]] (%p3125_p5), %s1801_s15  ;;  %s1260_s29 = scalar_lea.hbm %s3051_s6, %s1520_s12 }
 0x201   : > { %1585 = dma.general (%p3125_p5), %s1234_s7, 10240, %s1216_s14, %s1198_s0, %s1802_s8, [#allocation23], %s1803_s11, 0  }
 0x202   : > { %s1690_s19 = scalar_lea.vmem %s1263_s18, 128  ;;  %s1804_s16 = smov [#allocation12]  }
 0x203   : > { %p1691_p6 = scmp.ne.s32.totalorder %s1263_s18, %s1690_s19  ;;  %s1694_s20 = sshll.u32 %s1804_s16, 4  ;;  %s1695_s20 = int_to_ptr.vmem [resolvable:$false] %s1694_s20 }
 0x204   : > { %s1696_s13 = scalar_lea.vmem %s1695_s20, 256  ;;  %p1697_p7 = scmp.lt.s32.totalorder %s1263_s18, %s1695_s20 }
 0x205   : > { %p1692_p3 = pnand %p1691_p6, %p3125_p5  ;;  %p1698_p8 = scmp.lt.s32.totalorder %s1696_s13, %s1690_s19 }
 0x207   : > { %p1693_p4 = pneg %p1692_p3  ;;  %p1699_p11 = por %p1698_p8, %p1697_p7 }
 0x209   : > { %p1700_p12 = pnand %p1699_p11, %p1693_p4 }
 0x20b   : > { %1703 = shalt.err (!%p1700_p12)
}
 0x20c   : > { %s1704_s25 = scalar_lea.hbm %s1260_s29, 128  ;;  %s1708_s7 = scalar_lea.hbm %s3051_s6, 512 }
 0x20d   : > { %p1705_p13 = scmp.ne.s32.totalorder %s1260_s29, %s1704_s25  ;;  %p1709_p9 = scmp.lt.u32.totalorder %s1260_s29, %s3051_s6 }
 0x20e   : > { %p1710_p10 = scmp.lt.u32.totalorder %s1708_s7, %s1704_s25  ;;  %p1712_p6 = scmp.lt.u32.totalorder %s1704_s25, %s1260_s29 }
 0x20f   : > { %p1706_p1 = pnand %p1705_p13, %p3125_p5 }
 0x210   : > { %p1711_p0 = por %p1710_p10, %p1709_p9 }
 0x211   : > { %p1707_p2 = pneg %p1706_p1 }
 0x212   : > { %p1713_p3 = por %p1712_p6, %p1711_p0 }
 0x214   : > { %p1714_p4 = pnand %p1713_p3, %p1707_p2 }
 0x216   : > { %1717 = shalt.err (!%p1714_p4)
}
 0x217   : > { %1586 = dma.vmem_to_hbm [thread:$0]  (%p3125_p5), %s1263_s18, 128, %s1260_s29, %s1203_s1  }
 0x218 PF: > { %p1596_p7 = scmp.ge.s32.totalorder %s1768_s24, 2  ;;  %s1274_s8 = sand.u32 1, %s1756_s21  }
 0x219   : > { %p3126_p8 = scmp.ne.s32.totalorder %s3060_s10, 0  ;;  %s1275_s11 = scalar_lea.sflag [#allocation4], %s1274_s8 }
 0x21b   : > { %p1590_p11 = pnand %p1596_p7, %p3126_p8 }
 0x21d   : > { %1747 = dma.done.wait (!%p1590_p11), %s1275_s11, 10240  }
 0x21e   : > { %1749 = vsyncadd (!%p1590_p11), %s1275_s11, 4294957056  ;;  %s1284_s12 = scalar_lea.sflag [#allocation13], %s1274_s8 }
 0x21f   : > { %1751 = dma.done.wait (!%p1590_p11), %s1284_s12, 128  }
 0x220   : > { %1753 = vsyncadd (!%p1590_p11), %s1284_s12, 4294967168  ;;  %p29_p5 = scmp.ge.s32.totalorder %s1865_s27, 6   ;;  %s3127_s21 = smov %s1760_s22 }
 0x221   : > { %s3128_s22 = smov %s1764_s23  ;;  %s3129_s23 = smov %s1877_s30 }
 0x222   : > { %s3130_s24 = smov %s1865_s27  ;;  %31 = sbr.rel (!%p29_p5) target bundleno = 15 (0xf), region = 176 }
 0x229   :  { %1289 = vsyncpa [#allocation3], 1 }
 0x22a   :  { %1291 = vsyncpa [#allocation3 + $0x1], 1 }
 0x22b   :  { %1292 = vsyncpa [#allocation6], 1 }
 0x22c   :  { %1294 = vsyncpa [#allocation6 + $0x1], 1 }
 0x22d   :  { %1295 = vsyncpa [#allocation9], 1 }
 0x22e   :  { %1297 = vsyncpa [#allocation9 + $0x1], 1 }
 0x22f   :  { %1298 = vsyncpa [#allocation4], 1 }
 0x230   :  { %1300 = vsyncpa [#allocation4 + $0x1], 1 }
 0x231   :  { %1301 = vsyncpa [#allocation13], 1 }
 0x232   :  { %1303 = vsyncpa [#allocation13 + $0x1], 1 }

</bundles_post_ra>
